<compile_context>
chip_gen: v6e
topology: v6e:2x2x1
jax: 0.10.0
libtpu: 0.0.40
codegen_flags: <defaults>
</compile_context>

<pallas_src>
import jax
import jax.numpy as jnp
from jax import lax
from jax.experimental import pallas as pl
from jax.experimental.pallas import tpu as pltpu
import numpy as np


def indexed_hinge_loss_kernel(scores_ref, neg_ref, pos_ref, lmarg_ref,
                              out_ref, num_acc):
    g = pl.program_id(0)

    @pl.when(g == 0)
    def _init():
        num_acc[...] = jnp.zeros_like(num_acc)

    scores = scores_ref[0]     # (BB, T)   f32
    neg_ids = neg_ref[0]       # (BB, PN)  i32, raw (-1 preserved)
    pos_ids = pos_ref[0]       # (BB, PN)  i32, clamped to 0, repeated over N
    lm = lmarg_ref[0]          # (BB, PN)  f32, margins[levels]*ratio, repeated

    BB, T = scores.shape
    PN = neg_ids.shape[1]

    # Lane-dense one-hot gather: compare tensor is (BB, T, PN) with PN on the
    # 128-lane axis and T on sublanes; reduce over the T sublane axis (XLU).
    t_iota = lax.broadcasted_iota(jnp.int32, (T, PN), 0)        # tiny (T, PN)
    s3 = scores[:, :, None]                                     # (BB, T, 1)

    neg_g = jnp.sum(
        jnp.where(neg_ids[:, None, :] == t_iota[None], s3, 0.0), axis=1)
    pos_g = jnp.sum(
        jnp.where(pos_ids[:, None, :] == t_iota[None], s3, 0.0), axis=1)

    # Fold the -1 mask into the hinge: masked entries become ~-inf so the relu
    # produces exactly 0 (replaces bool->f32 cast + multiply).
    neg_sel = jnp.where(neg_ids != -1, neg_g, jnp.float32(-1e30))
    num_acc[...] += jnp.maximum(lm - pos_g + neg_sel, 0.0)      # (BB, PN)

    @pl.when(g == pl.num_programs(0) - 1)
    def _finalize():
        out_ref[...] = jnp.ones((1, 1), jnp.float32) * jnp.sum(num_acc[...])


def indexed_hinge_loss(scores, pos_type_ids, neg_type_ids, levels, margins,
                       margin_ratio, block_b=256):
    """Pallas TPU implementation of IndexedHingeLoss.forward (returns scalar)."""
    B, T = scores.shape
    P = pos_type_ids.shape[1]
    N = neg_type_ids.shape[2]
    PN = P * N

    scores = scores.astype(jnp.float32)
    pos_type_ids = pos_type_ids.astype(jnp.int32)
    neg_type_ids = neg_type_ids.astype(jnp.int32)

    # Score-independent pieces precomputed in the wrapper (cheap XLA ops):
    #   * denominator = number of valid negatives
    #   * level margins table lookup * ratio, repeated over N (lane-dense)
    #   * clamped positive ids repeated over N (lane-dense gather operand)
    den = jnp.sum((neg_type_ids != -1).astype(jnp.float32))
    lm = margins.astype(jnp.float32)[levels] * jnp.float32(margin_ratio)  # (B,P)
    lm_rep = jnp.repeat(lm, N, axis=1)                                    # (B,PN)
    pos_safe = jnp.where(pos_type_ids != -1, pos_type_ids, 0)             # (B,P)
    pos_rep = jnp.repeat(pos_safe, N, axis=1)                             # (B,PN)
    neg_flat = neg_type_ids.reshape(B, PN)                                # raw -1s

    # Batch blocking: large blocks amortize per-step overhead; cap so the live
    # (BB, T, PN) compare tensor stays well inside scoped VMEM on all chips.
    vmem_budget = 8 * 1024 * 1024
    bytes_per_row = max(1, T * PN * 4)
    max_bb = max(8, (vmem_budget // bytes_per_row) // 8 * 8)
    B8 = ((B + 7) // 8) * 8
    BB = min(block_b, B8, max_bb)
    G = -(-B // BB)
    Bp = G * BB
    if Bp != B:
        pad = Bp - B
        # Padded rows: neg ids == -1  ->  zero contribution to the numerator.
        scores = jnp.pad(scores, ((0, pad), (0, 0)))
        neg_flat = jnp.pad(neg_flat, ((0, pad), (0, 0)), constant_values=-1)
        pos_rep = jnp.pad(pos_rep, ((0, pad), (0, 0)))
        lm_rep = jnp.pad(lm_rep, ((0, pad), (0, 0)))

    scores_g = scores.reshape(G, BB, T)
    neg_g = neg_flat.reshape(G, BB, PN)
    pos_g = pos_rep.reshape(G, BB, PN)
    lm_g = lm_rep.reshape(G, BB, PN)

    grid_spec = pltpu.PrefetchScalarGridSpec(
        num_scalar_prefetch=0,
        grid=(G,),
        in_specs=[
            pl.BlockSpec((1, BB, T), lambda g: (g, 0, 0)),    # scores
            pl.BlockSpec((1, BB, PN), lambda g: (g, 0, 0)),   # neg ids (flat)
            pl.BlockSpec((1, BB, PN), lambda g: (g, 0, 0)),   # pos ids (rep)
            pl.BlockSpec((1, BB, PN), lambda g: (g, 0, 0)),   # level margins
        ],
        out_specs=pl.BlockSpec((1, 1), lambda g: (0, 0)),     # numerator sum
        scratch_shapes=[pltpu.VMEM((BB, PN), jnp.float32)],   # numerator acc
    )

    num = pl.pallas_call(
        indexed_hinge_loss_kernel,
        out_shape=jax.ShapeDtypeStruct((1, 1), jnp.float32),
        grid_spec=grid_spec,
        compiler_params=pltpu.CompilerParams(
            dimension_semantics=("arbitrary",)),   # batch axis is a reduction
    )(scores_g, neg_g, pos_g, lm_g)

    # NOTE: den == 0 (all negative ids == -1) yields NaN, matching the module.
    return num[0, 0] / den


def reference_loss(scores, pos_type_ids, neg_type_ids, levels, margins,
                   margin_ratio):
    """Pure-JAX reference mirroring the PyTorch module."""
    B = scores.shape[0]
    neg_mask = neg_type_ids != -1
    pos_safe = jnp.where(pos_type_ids != -1, pos_type_ids, 0)
    neg_safe = jnp.where(neg_mask, neg_type_ids, 0)
    br = jnp.arange(B)
    pos_scores = scores[br[:, None], pos_safe]                       # (B, P)
    neg_scores = scores[br[:, None, None], neg_safe]                 # (B, P, N)
    level_margins = margins[levels] * margin_ratio                   # (B, P)
    diff = jnp.maximum(
        level_margins[:, :, None] - pos_scores[:, :, None] + neg_scores, 0.0)
    m = neg_mask.astype(jnp.float32)
    return (diff * m).sum() / m.sum()


if __name__ == "__main__":
    key = jax.random.PRNGKey(0)
    k1, k2, k3, k4 = jax.random.split(key, 4)

    # batch, num types, pos/neg per row, levels.
    B, T, P, N, L = 10, 32, 8, 8, 4

    scores = jax.random.normal(k1, (B, T), dtype=jnp.float32)
    pos_type_ids = jax.random.randint(k2, (B, P), 0, T, dtype=jnp.int32)
    neg_type_ids = jax.random.randint(k3, (B, P, N), 0, T, dtype=jnp.int32)
    levels = jax.random.randint(k4, (B, P), 0, L, dtype=jnp.int32)

    # Introduce some -1 padding, as the module expects.
    pos_type_ids = pos_type_ids.at[:, -2:].set(-1)
    neg_type_ids = neg_type_ids.at[:, :, -3:].set(-1)
    neg_type_ids = neg_type_ids.at[1, -1, :].set(-1)

    # Deterministic "parameter" init (module stores margins as a frozen param).
    margins = jnp.arange(1, L + 1, dtype=jnp.float32) * 0.25
    margin_ratio = 0.5

    # torch assert: margins covers all levels
    assert int(margins.shape[0]) - 1 >= int(jnp.max(levels))

    loss = indexed_hinge_loss(scores, pos_type_ids, neg_type_ids, levels,
                              margins, margin_ratio)
    jax.block_until_ready(loss)

    ref = reference_loss(scores, pos_type_ids, neg_type_ids, levels,
                         margins, margin_ratio)
    np.testing.assert_allclose(np.asarray(loss), np.asarray(ref),
                               rtol=1e-5, atol=1e-6)

    print("KERNEL_OK")
</pallas_src>

<mosaic_0001>
module attributes {stable_mosaic.version = 11 : i64} {
  func.func @indexed_hinge_loss_kernel(%arg0: i32, %arg1: memref<1x16x32xf32, #tpu.memory_space<vmem>>, %arg2: memref<1x16x64xi32, #tpu.memory_space<vmem>>, %arg3: memref<1x16x64xi32, #tpu.memory_space<vmem>>, %arg4: memref<1x16x64xf32, #tpu.memory_space<vmem>>, %arg5: memref<1x1xf32, #tpu.memory_space<vmem>>, %arg6: memref<16x64xf32, #tpu.memory_space<vmem>>) attributes {dimension_semantics = [#tpu.dimension_semantics<arbitrary>], iteration_bounds = array<i64: 1>, scalar_prefetch = 0 : i64, scratch_operands = 1 : i64, tpu.core_type = #tpu.core_type<tc>, window_params = [{transform_indices = @transform_0, window_bounds = array<i64: 1, 16, 32>}, {transform_indices = @transform_1, window_bounds = array<i64: 1, 16, 64>}, {transform_indices = @transform_2, window_bounds = array<i64: 1, 16, 64>}, {transform_indices = @transform_3, window_bounds = array<i64: 1, 16, 64>}, {pipeline_mode = #tpu.pipeline_mode<synchronous>, transform_indices = @transform_4, window_bounds = array<i64: 1, 1>}]} {
    %c0_i32 = arith.constant 0 : i32
    %0 = arith.cmpi eq, %arg0, %c0_i32 : i32
    %1 = arith.extui %0 : i1 to i32
    %c0_i32_0 = arith.constant 0 : i32
    %2 = arith.cmpi ne, %1, %c0_i32_0 : i32
    scf.if %2 {
      %cst_23 = arith.constant 0.000000e+00 : f32
      %47 = vector.broadcast %cst_23 : f32 to vector<16x64xf32>
      %c0_24 = arith.constant 0 : index
      %c0_25 = arith.constant 0 : index
      %48 = vector.load %arg6[%c0_24, %c0_25] : memref<16x64xf32, #tpu.memory_space<vmem>>, vector<16x64xf32>
      tpu.vector_store %arg6[%c0_24, %c0_25], %47 {strides = array<i32>} : memref<16x64xf32, #tpu.memory_space<vmem>>, vector<16x64xf32>,
    } else {
    }
    %c0 = arith.constant 0 : index
    %c0_1 = arith.constant 0 : index
    %c0_2 = arith.constant 0 : index
    %3 = vector.load %arg1[%c0, %c0_1, %c0_2] : memref<1x16x32xf32, #tpu.memory_space<vmem>>, vector<1x16x32xf32>
    %4 = vector.shape_cast %3 : vector<1x16x32xf32> to vector<16x32xf32>
    %c0_3 = arith.constant 0 : index
    %c0_4 = arith.constant 0 : index
    %c0_5 = arith.constant 0 : index
    %5 = vector.load %arg2[%c0_3, %c0_4, %c0_5] : memref<1x16x64xi32, #tpu.memory_space<vmem>>, vector<1x16x64xi32>
    %6 = vector.shape_cast %5 : vector<1x16x64xi32> to vector<16x64xi32>
    %c0_6 = arith.constant 0 : index
    %c0_7 = arith.constant 0 : index
    %c0_8 = arith.constant 0 : index
    %7 = vector.load %arg3[%c0_6, %c0_7, %c0_8] : memref<1x16x64xi32, #tpu.memory_space<vmem>>, vector<1x16x64xi32>
    %8 = vector.shape_cast %7 : vector<1x16x64xi32> to vector<16x64xi32>
    %c0_9 = arith.constant 0 : index
    %c0_10 = arith.constant 0 : index
    %c0_11 = arith.constant 0 : index
    %9 = vector.load %arg4[%c0_9, %c0_10, %c0_11] : memref<1x16x64xf32, #tpu.memory_space<vmem>>, vector<1x16x64xf32>
    %10 = vector.shape_cast %9 : vector<1x16x64xf32> to vector<16x64xf32>
    %11 = tpu.iota {dimensions = array<i32: 0>} : vector<32x64xi32>
    %12 = vector.shape_cast %4 : vector<16x32xf32> to vector<16x32x1xf32>
    %13 = vector.shape_cast %6 : vector<16x64xi32> to vector<16x1x64xi32>
    %14 = vector.shape_cast %11 : vector<32x64xi32> to vector<1x32x64xi32>
    %15 = vector.broadcast %13 : vector<16x1x64xi32> to vector<16x32x64xi32>
    %16 = vector.broadcast %14 : vector<1x32x64xi32> to vector<16x32x64xi32>
    %17 = arith.cmpi eq, %15, %16 : vector<16x32x64xi32>
    %cst = arith.constant 0.000000e+00 : f32
    %18 = vector.shape_cast %12 : vector<16x32x1xf32> to vector<16x32x1xf32>
    %19 = vector.broadcast %18 : vector<16x32x1xf32> to vector<16x32x64xf32>
    %20 = vector.broadcast %cst : f32 to vector<16x32x64xf32>
    %21 = arith.select %17, %19, %20 : vector<16x32x64xi1>, vector<16x32x64xf32>
    %cst_12 = arith.constant dense<0.000000e+00> : vector<16x64xf32>
    %22 = vector.multi_reduction <add>, %21, %cst_12 [1] : vector<16x32x64xf32> to vector<16x64xf32>
    %23 = vector.shape_cast %8 : vector<16x64xi32> to vector<16x1x64xi32>
    %24 = vector.shape_cast %11 : vector<32x64xi32> to vector<1x32x64xi32>
    %25 = vector.broadcast %23 : vector<16x1x64xi32> to vector<16x32x64xi32>
    %26 = vector.broadcast %24 : vector<1x32x64xi32> to vector<16x32x64xi32>
    %27 = arith.cmpi eq, %25, %26 : vector<16x32x64xi32>
    %cst_13 = arith.constant 0.000000e+00 : f32
    %28 = vector.shape_cast %12 : vector<16x32x1xf32> to vector<16x32x1xf32>
    %29 = vector.broadcast %28 : vector<16x32x1xf32> to vector<16x32x64xf32>
    %30 = vector.broadcast %cst_13 : f32 to vector<16x32x64xf32>
    %31 = arith.select %27, %29, %30 : vector<16x32x64xi1>, vector<16x32x64xf32>
    %cst_14 = arith.constant dense<0.000000e+00> : vector<16x64xf32>
    %32 = vector.multi_reduction <add>, %31, %cst_14 [1] : vector<16x32x64xf32> to vector<16x64xf32>
    %c-1_i32 = arith.constant -1 : i32
    %33 = vector.broadcast %c-1_i32 : i32 to vector<16x64xi32>
    %34 = arith.cmpi ne, %6, %33 : vector<16x64xi32>
    %cst_15 = arith.constant -1.000000e+30 : f32
    %35 = vector.broadcast %cst_15 : f32 to vector<16x64xf32>
    %36 = arith.select %34, %22, %35 : vector<16x64xi1>, vector<16x64xf32>
    %c0_16 = arith.constant 0 : index
    %c0_17 = arith.constant 0 : index
    %37 = vector.load %arg6[%c0_16, %c0_17] : memref<16x64xf32, #tpu.memory_space<vmem>>, vector<16x64xf32>
    %38 = arith.subf %10, %32 : vector<16x64xf32>
    %39 = arith.addf %38, %36 : vector<16x64xf32>
    %cst_18 = arith.constant 0.000000e+00 : f32
    %40 = vector.broadcast %cst_18 : f32 to vector<16x64xf32>
    %41 = arith.maximumf %39, %40 : vector<16x64xf32>
    %42 = arith.addf %37, %41 : vector<16x64xf32>
    %c0_19 = arith.constant 0 : index
    %c0_20 = arith.constant 0 : index
    %43 = vector.load %arg6[%c0_19, %c0_20] : memref<16x64xf32, #tpu.memory_space<vmem>>, vector<16x64xf32>
    tpu.vector_store %arg6[%c0_19, %c0_20], %42 {strides = array<i32>} : memref<16x64xf32, #tpu.memory_space<vmem>>, vector<16x64xf32>,
    %c0_i32_21 = arith.constant 0 : i32
    %44 = arith.cmpi eq, %arg0, %c0_i32_21 : i32
    %45 = arith.extui %44 : i1 to i32
    %c0_i32_22 = arith.constant 0 : i32
    %46 = arith.cmpi ne, %45, %c0_i32_22 : i32
    scf.if %46 {
      %cst_23 = arith.constant 1.000000e+00 : f32
      %47 = vector.broadcast %cst_23 : f32 to vector<1x1xf32>
      %c0_24 = arith.constant 0 : index
      %c0_25 = arith.constant 0 : index
      %48 = vector.load %arg6[%c0_24, %c0_25] : memref<16x64xf32, #tpu.memory_space<vmem>>, vector<16x64xf32>
      %49 = vector.shape_cast %48 : vector<16x64xf32> to vector<1x16x64xf32>
      %cst_26 = arith.constant dense<0.000000e+00> : vector<1xf32>
      %50 = vector.multi_reduction <add>, %49, %cst_26 [1, 2] : vector<1x16x64xf32> to vector<1xf32>
      %51 = vector.shape_cast %50 : vector<1xf32> to vector<1x1x1xf32>
      %52 = vector.extract %51[0, 0, 0] : f32 from vector<1x1x1xf32>
      %53 = vector.broadcast %52 : f32 to vector<1x1xf32>
      %54 = arith.mulf %47, %53 : vector<1x1xf32>
      %c0_27 = arith.constant 0 : index
      %c0_28 = arith.constant 0 : index
      %55 = vector.load %arg5[%c0_27, %c0_28] : memref<1x1xf32, #tpu.memory_space<vmem>>, vector<1x1xf32>
      tpu.vector_store %arg5[%c0_27, %c0_28], %54 {strides = array<i32>} : memref<1x1xf32, #tpu.memory_space<vmem>>, vector<1x1xf32>,
    } else {
    }
    return
  }
  func.func @transform_0(%arg0: i32) -> (i32, i32, i32) {
    %c0_i32 = arith.constant 0 : i32
    %c0_i32_0 = arith.constant 0 : i32
    %c0_i32_1 = arith.constant 0 : i32
    return %arg0, %c0_i32, %c0_i32_0 : i32, i32, i32
  }
  func.func @transform_1(%arg0: i32) -> (i32, i32, i32) {
    %c0_i32 = arith.constant 0 : i32
    %c0_i32_0 = arith.constant 0 : i32
    %c0_i32_1 = arith.constant 0 : i32
    return %arg0, %c0_i32, %c0_i32_0 : i32, i32, i32
  }
  func.func @transform_2(%arg0: i32) -> (i32, i32, i32) {
    %c0_i32 = arith.constant 0 : i32
    %c0_i32_0 = arith.constant 0 : i32
    %c0_i32_1 = arith.constant 0 : i32
    return %arg0, %c0_i32, %c0_i32_0 : i32, i32, i32
  }
  func.func @transform_3(%arg0: i32) -> (i32, i32, i32) {
    %c0_i32 = arith.constant 0 : i32
    %c0_i32_0 = arith.constant 0 : i32
    %c0_i32_1 = arith.constant 0 : i32
    return %arg0, %c0_i32, %c0_i32_0 : i32, i32, i32
  }
  func.func @transform_4(%arg0: i32) -> (i32, i32) {
    %c0_i32 = arith.constant 0 : i32
    %c0_i32_0 = arith.constant 0 : i32
    %c0_i32_1 = arith.constant 0 : i32
    return %c0_i32, %c0_i32_0 : i32, i32
  }
}

</mosaic_0001>

<bundles_post_ra>
// kernel: tpu_custom_call.1
= control target key start
LH: loop header
LB: loop body
LE: loop exit
PB: predicated region body
PF: predicated region fallthrough
CT: control target
= control target key end

     0   :  { %9 = vsyncpa [#allocation4], 0  ;;  %s3067_s0 = inlined_call_operand.hbm [shape: f32[1,16,32], index: 0, kind: input, shape index: {}]   ;;  %s3068_s1 = inlined_call_operand.hbm [shape: s32[1,16,64], index: 1, kind: input, shape index: {}]   ;;  %s3069_s2 = inlined_call_operand.hbm [shape: s32[1,16,64], index: 2, kind: input, shape index: {}]   ;;  %s3070_s3 = inlined_call_operand.hbm [shape: f32[1,16,64], index: 3, kind: input, shape index: {}]   ;;  %s3071_s4 = inlined_call_operand.hbm [shape: f32[1,1], index: 4, kind: output, shape index: {}]  }
   0x1   :  { %10 = vsyncpa [#allocation7], 0 }
   0x2   :  { %11 = vsyncpa [#allocation10], 0 }
   0x3   :  { %12 = vsyncpa [#allocation5], 0  ;;  %s1643_s15 = smov [#allocation6]   ;;  %s1644_s17 = smov [#allocation3]  }
   0x4   :  { %s30_s16 = sshll.u32 %s1643_s15, 4  ;;  %s18_s18 = sshll.u32 %s1644_s17, 4  ;;  %s31_s16 = int_to_ptr.vmem [resolvable:$true] %s30_s16  ;;  %s19_s18 = int_to_ptr.vmem [resolvable:$true] %s18_s18 }
   0x5   :  { %s1543_s19 = scalar_lea.vmem %s31_s16, 256  ;;  %p1548_p1 = scmp.lt.s32.totalorder %s31_s16, %s31_s16 }
   0x6   :  { %p1544_p0 = scmp.ne.s32.totalorder %s31_s16, %s1543_s19  ;;  %p1549_p2 = scmp.lt.s32.totalorder %s1543_s19, %s1543_s19 }
   0x8   :  { %p1550_p3 = por %p1549_p2, %p1548_p1 }
   0xa   :  { %p1551_p4 = pnand %p1550_p3, %p1544_p0 }
   0xc   :  { %1554 = shalt.err (!%p1551_p4)
}
   0xd   :  { %s1645_s20 = smov 128   ;;  %s1646_s21 = smov 8  }
   0xe   :  { %36 = dma.hbm_to_vmem [thread:$0]  %s3068_s1, 256, %s31_s16, [#allocation7], %s1645_s20, %s1645_s20, %s1646_s21  }
   0xf   :  { %s1563_s24 = scalar_lea.vmem %s19_s18, 256  ;;  %p1568_p6 = scmp.lt.s32.totalorder %s19_s18, %s19_s18 }
  0x10   :  { %p1564_p5 = scmp.ne.s32.totalorder %s19_s18, %s1563_s24  ;;  %p1569_p7 = scmp.lt.s32.totalorder %s1563_s24, %s1563_s24 }
  0x12   :  { %p1570_p8 = por %p1569_p7, %p1568_p6 }
  0x14   :  { %p1571_p9 = pnand %p1570_p8, %p1564_p5 }
  0x16   :  { %1574 = shalt.err (!%p1571_p9)
}
  0x17   :  { %24 = dma.hbm_to_vmem [thread:$0]  %s3067_s0, 256, %s19_s18, [#allocation4], %s1645_s20, %s1645_s20, %s1646_s21  }
  0x18   :  { %s1647_s27 = smov [#allocation8]   ;;  %s1648_s29 = smov [#allocation9]  }
  0x19   :  { %s42_s28 = sshll.u32 %s1647_s27, 4  ;;  %s54_s30 = sshll.u32 %s1648_s29, 4  ;;  %s43_s28 = int_to_ptr.vmem [resolvable:$true] %s42_s28  ;;  %s55_s30 = int_to_ptr.vmem [resolvable:$true] %s54_s30 }
  0x1a   :  { %s1583_s1 = scalar_lea.vmem %s43_s28, 256  ;;  %p1588_p11 = scmp.lt.s32.totalorder %s43_s28, %s43_s28 }
  0x1b   :  { %p1584_p10 = scmp.ne.s32.totalorder %s43_s28, %s1583_s1  ;;  %p1589_p12 = scmp.lt.s32.totalorder %s1583_s1, %s1583_s1 }
  0x1d   :  { %p1590_p13 = por %p1589_p12, %p1588_p11 }
  0x1f   :  { %p1591_p0 = pnand %p1590_p13, %p1584_p10 }
  0x21   :  { %1594 = shalt.err (!%p1591_p0)
}
  0x22   :  { %48 = dma.hbm_to_vmem [thread:$0]  %s3069_s2, 256, %s43_s28, [#allocation7], %s1645_s20, %s1645_s20, %s1646_s21  }
  0x23   :  { %s1603_s0 = scalar_lea.vmem %s55_s30, 256  ;;  %p1608_p2 = scmp.lt.s32.totalorder %s55_s30, %s55_s30 }
  0x24   :  { %p1604_p1 = scmp.ne.s32.totalorder %s55_s30, %s1603_s0  ;;  %p1609_p3 = scmp.lt.s32.totalorder %s1603_s0, %s1603_s0 }
  0x26   :  { %p1610_p4 = por %p1609_p3, %p1608_p2 }
  0x28   :  { %p1611_p5 = pnand %p1610_p4, %p1604_p1 }
  0x2a   :  { %1614 = shalt.err (!%p1611_p5)
}
  0x2b   :  { %60 = dma.hbm_to_vmem [thread:$0]  %s3070_s3, 256, %s55_s30, [#allocation10], %s1645_s20, %s1645_s20, %s1646_s21  }
  0x2c   :  { %1635 = dma.done.wait [#allocation4], 256  }
  0x2d   :  { %1636 = vsyncadd [#allocation4], 4294967040 }
  0x2e   :  { %1637 = dma.done.wait [#allocation7], 512  }
  0x2f   :  { %1638 = vsyncadd [#allocation7], 4294966784 }
  0x30   :  { %1639 = dma.done.wait [#allocation10], 256  }
  0x31   :  { %1640 = vsyncadd [#allocation10], 4294967040  ;;  %v88_v0 = vlaneseq  ;;  %v1707_v4 = vld [vmem:[#allocation3] sm:$0xff]  ;;  %v1712_v7 = vld [vmem:[#allocation3 + $0x8] sm:$0xff]  ;;  %v1649_v25 = vmov 1966171168  }
  0x32   :  { %v399_v26 = vunpack.c.l.s4 %v1649_v25  ;;  %v1763_v31 = vld [vmem:[#allocation6] sm:$0xff]  ;;  %v1765_v32 = vld [vmem:[#allocation8] sm:$0xff]  ;;  %v1775_v36 = vld [vmem:[#allocation6 + $0x8] sm:$0xff]  ;;  %vm77_vm6 = vcmask 523264   ;;  %s1651_s2 = smov [#allocation11]  }
  0x33   :  { %v1701_v1 = vshrl.u32 %v88_v0, 7  ;;  %v1777_v39 = vld [vmem:[#allocation8 + $0x8] sm:$0xff]  ;;  %s1507_s3 = sshll.u32 %s1651_s2, 4  ;;  %s1508_s3 = int_to_ptr.vmem [resolvable:$true] %s1507_s3 }
  0x34   :  { %v400_v28 = vunpack.c.0.s8 %v399_v26  ;;  %s1615_s10 = scalar_lea.vmem %s1508_s3, 16  ;;  %s1619_s11 = scalar_lea.vmem %s1508_s3, 32 }
  0x35   :  { %v114_v2 = vsub.s32 1, %v1701_v1  ;;  %v1705_v3 = vsub.s32 0, %v1701_v1  ;;  %v133_v10 = vsub.s32 2, %v1701_v1  ;;  %v152_v13 = vsub.s32 3, %v1701_v1  ;;  %p1616_p6 = scmp.ne.s32.totalorder %s1508_s3, %s1615_s10  ;;  %p1620_p7 = scmp.lt.s32.totalorder %s1508_s3, %s1508_s3 }
  0x36   :  { %v171_v16 = vsub.s32 4, %v1701_v1  ;;  %v190_v19 = vsub.s32 5, %v1701_v1  ;;  %v209_v22 = vsub.s32 6, %v1701_v1  ;;  %v228_v27 = vsub.s32 7, %v1701_v1  ;;  %p1621_p8 = scmp.lt.s32.totalorder %s1619_s11, %s1615_s10 }
  0x37   :  { %v115_v5 = vrot.slane %v1707_v4, %v114_v2  ;;  %v96_v6 = vrot.slane %v1707_v4, %v1705_v3  ;;  %v248_v8 = vrot.slane %v1712_v7, %v1705_v3  ;;  %v267_v9 = vrot.slane %v1712_v7, %v114_v2 }
  0x38   :  { %v134_v11 = vrot.slane %v1707_v4, %v133_v10  ;;  %v286_v12 = vrot.slane %v1712_v7, %v133_v10  ;;  %v153_v14 = vrot.slane %v1707_v4, %v152_v13  ;;  %v305_v15 = vrot.slane %v1712_v7, %v152_v13  ;;  %p1622_p9 = por %p1621_p8, %p1620_p7 }
  0x39   :  { %117 = vbcast.lane.b32.xlu1 %v115_v5, 256  ;;  %98 = vbcast.lane.b32.xlu0 %v96_v6, 256  ;;  %v172_v17 = vrot.slane %v1707_v4, %v171_v16  ;;  %v1726_v18 = vrot.slane %v1712_v7, %v171_v16  ;;  %v1732_v20 = vrot.slane %v1707_v4, %v190_v19  ;;  %v1811_v54 = vadd.s32 8, %v1701_v1 }
  0x3a   :  { %v1737_v21 = vrot.slane %v1712_v7, %v190_v19  ;;  %v1743_v23 = vrot.slane %v1707_v4, %v209_v22  ;;  %v1749_v24 = vrot.slane %v1712_v7, %v209_v22  ;;  %v1756_v29 = vrot.slane %v1707_v4, %v228_v27  ;;  %p1623_p10 = pnand %p1622_p9, %p1616_p6 }
  0x3b   :  { %v1759_v30 = vsub.s32 %v400_v28, %v1701_v1  ;;  %v1773_v35 = vrot.slane %v1712_v7, %v228_v27  ;;  %v1883_v10 = vadd.s32 16, %v1701_v1 }
  0x3d   :  { %121 = vbcast.lane.b32.xlu1 %v115_v5, 264  ;;  %102 = vbcast.lane.b32.xlu0 %v96_v6, 264  ;;  %v404_v33 = vrot.slane %v1763_v31, %v1759_v30  ;;  %v903_v34 = vrot.slane %v1765_v32, %v1759_v30  ;;  %v453_v40 = vrot.slane %v1775_v36, %v1759_v30 }
  0x3e   :  { %v952_v43 = vrot.slane %v1777_v39, %v1759_v30 }
  0x3f   :  { %v412_v37 = vcombine.high %v404_v33, %v404_v33  ;;  %v911_v38 = vcombine.high %v903_v34, %v903_v34  ;;  %v420_v41 = vrot.slane %v404_v33, %v1759_v30  ;;  %v919_v42 = vrot.slane %v903_v34, %v1759_v30 }
  0x40   :  { %v469_v46 = vrot.slane %v453_v40, %v1759_v30  ;;  %v461_v47 = vcombine.high %v453_v40, %v453_v40  ;;  %v960_v48 = vcombine.high %v952_v43, %v952_v43  ;;  %v968_v51 = vrot.slane %v952_v43, %v1759_v30 }
  0x41   :  { %254 = vbcast.lane.b32.xlu1 %v248_v8, 264  ;;  %250 = vbcast.lane.b32.xlu0 %v248_v8, 256  ;;  %v1788_v44 = vrot.slane %v412_v37, %v1759_v30  ;;  %v1791_v45 = vrot.slane %v911_v38, %v1759_v30  ;;  %v1796_v49 = vrot.slane %v420_v41, %v1705_v3 }
  0x42   :  { %v1799_v50 = vrot.slane %v919_v42, %v1705_v3  ;;  %v1816_v55 = vrot.slane %v469_v46, %v1705_v3  ;;  %v1819_v56 = vrot.slane %v461_v47, %v1759_v30  ;;  %v1822_v57 = vrot.slane %v960_v48, %v1759_v30 }
  0x43   :  { %v1804_v52 = vrot.slane %v1788_v44, %v1705_v3  ;;  %v1808_v53 = vrot.slane %v1791_v45, %v1705_v3  ;;  %vm559_vm0 = vcmp.eq.s32.totalorder %v1796_v49, %v1701_v1  ;;  %v1829_v58 = vrot.slane %v968_v51, %v1705_v3 }
  0x44   :  { %vm1058_vm1 = vcmp.eq.s32.totalorder %v1799_v50, %v1701_v1  ;;  %vm560_vm4 = vcmp.eq.s32.totalorder %v1796_v49, %v1811_v54  ;;  %vm1059_vm5 = vcmp.eq.s32.totalorder %v1799_v50, %v1811_v54  ;;  %vm592_vm8 = vcmp.eq.s32.totalorder %v1816_v55, %v1811_v54 }
  0x45   :  { %273 = vbcast.lane.b32.xlu1 %v267_v9, 264  ;;  %269 = vbcast.lane.b32.xlu0 %v267_v9, 256  ;;  %vm563_vm2 = vcmp.eq.s32.totalorder %v1804_v52, %v1701_v1  ;;  %vm1062_vm3 = vcmp.eq.s32.totalorder %v1808_v53, %v1701_v1  ;;  %vm564_vm7 = vcmp.eq.s32.totalorder %v1804_v52, %v1811_v54 }
  0x46   :  { %v1847_v59 = vrot.slane %v1819_v56, %v1705_v3  ;;  %v442_v60 = vcombine.high %v420_v41, %v420_v41  ;;  %v1851_v61 = vrot.slane %v1822_v57, %v1705_v3  ;;  %v941_v62 = vcombine.high %v919_v42, %v919_v42 }
  0x47   :  { %v491_v63 = vcombine.high %v469_v46, %v469_v46  ;;  %v990_v0 = vcombine.high %v968_v51, %v968_v51  ;;  %vm1063_vm9 = vcmp.eq.s32.totalorder %v1808_v53, %v1811_v54  ;;  %vm1091_vm10 = vcmp.eq.s32.totalorder %v1829_v58, %v1811_v54 }
  0x48   :  { %vm591_vm11 = vcmp.eq.s32.totalorder %v1816_v55, %v1701_v1  ;;  %vm1090_vm12 = vcmp.eq.s32.totalorder %v1829_v58, %v1701_v1  ;;  %vm596_vm13 = vcmp.eq.s32.totalorder %v1847_v59, %v1811_v54  ;;  %vm595_vm14 = vcmp.eq.s32.totalorder %v1847_v59, %v1701_v1 }
  0x49   :  { %140 = vbcast.lane.b32.xlu1 %v134_v11, 264  ;;  %136 = vbcast.lane.b32.xlu0 %v134_v11, 256  ;;  %vm1095_vm15 = vcmp.eq.s32.totalorder %v1851_v61, %v1811_v54  ;;  %v1894_v13 = vrot.slane %v990_v0, %v1705_v3 }
  0x4d   :  { %292 = vbcast.lane.b32.xlu1 %v286_v12, 264  ;;  %288 = vbcast.lane.b32.xlu0 %v286_v12, 256 }
  0x51   :  { %125 = vbcast.lane.b32.xlu1 %v115_v5, 272  ;;  %106 = vbcast.lane.b32.xlu0 %v96_v6, 272 }
  0x55   :  { %159 = vbcast.lane.b32.xlu1 %v153_v14, 264  ;;  %155 = vbcast.lane.b32.xlu0 %v153_v14, 256 }
  0x59   :  { %277 = vbcast.lane.b32.xlu1 %v267_v9, 272  ;;  %258 = vbcast.lane.b32.xlu0 %v248_v8, 272 }
  0x5d   :  { %311 = vbcast.lane.b32.xlu1 %v305_v15, 264  ;;  %307 = vbcast.lane.b32.xlu0 %v305_v15, 256 }
  0x61   :  { %174 = vbcast.lane.b32.xlu1 %v172_v17, 256  ;;  %144 = vbcast.lane.b32.xlu0 %v134_v11, 272 }
  0x65   :  { %296 = vbcast.lane.b32.xlu1 %v286_v12, 272  ;;  %178 = vbcast.lane.b32.xlu0 %v172_v17, 264 }
  0x69   :  { %330 = vbcast.lane.b32.xlu1 %v1726_v18, 264  ;;  %326 = vbcast.lane.b32.xlu0 %v1726_v18, 256 }
  0x6d   :  { %129 = vbcast.lane.b32.xlu1 %v115_v5, 280  ;;  %110 = vbcast.lane.b32.xlu0 %v96_v6, 280 }
  0x71   :  { %193 = vbcast.lane.b32.xlu1 %v1732_v20, 256  ;;  %163 = vbcast.lane.b32.xlu0 %v153_v14, 272 }
  0x75   :  { %262 = vbcast.lane.b32.xlu1 %v248_v8, 280  ;;  %197 = vbcast.lane.b32.xlu0 %v1732_v20, 264 }
  0x79   :  { %315 = vbcast.lane.b32.xlu1 %v305_v15, 272  ;;  %281 = vbcast.lane.b32.xlu0 %v267_v9, 280  ;;  %v1880_v9 = vrot.slane %v442_v60, %v1705_v3 }
  0x7d   :  { %349 = vbcast.lane.b32.xlu1 %v1737_v21, 264  ;;  %345 = vbcast.lane.b32.xlu0 %v1737_v21, 256 }
  0x81   :  { %182 = vbcast.lane.b32.xlu1 %v172_v17, 272  ;;  %148 = vbcast.lane.b32.xlu0 %v134_v11, 280  ;;  %v1888_v11 = vrot.slane %v941_v62, %v1705_v3 }
  0x85   :  { %216 = vbcast.lane.b32.xlu1 %v1743_v23, 264  ;;  %212 = vbcast.lane.b32.xlu0 %v1743_v23, 256 }
  0x89   :  { %334 = vbcast.lane.b32.xlu1 %v1726_v18, 272  ;;  %300 = vbcast.lane.b32.xlu0 %v286_v12, 280  ;;  %v1891_v12 = vrot.slane %v491_v63, %v1705_v3 }
  0x8d   :  { %368 = vbcast.lane.b32.xlu1 %v1749_v24, 264  ;;  %364 = vbcast.lane.b32.xlu0 %v1749_v24, 256 }
  0x91   :  { %201 = vbcast.lane.b32.xlu1 %v1732_v20, 272  ;;  %167 = vbcast.lane.b32.xlu0 %v153_v14, 280 }
  0x95   :  { %235 = vbcast.lane.b32.xlu1 %v1756_v29, 264  ;;  %231 = vbcast.lane.b32.xlu0 %v1756_v29, 256 }
  0x99   :  { %353 = vbcast.lane.b32.xlu1 %v1737_v21, 272  ;;  %319 = vbcast.lane.b32.xlu0 %v305_v15, 280 }
  0x9d   :  { %387 = vbcast.lane.b32.xlu1 %v1773_v35, 264  ;;  %383 = vbcast.lane.b32.xlu0 %v1773_v35, 256 }
  0xa1   :  { %220 = vbcast.lane.b32.xlu1 %v1743_v23, 272  ;;  %186 = vbcast.lane.b32.xlu0 %v172_v17, 280 }
  0xa5   :  { %372 = vbcast.lane.b32.xlu1 %v1749_v24, 272  ;;  %338 = vbcast.lane.b32.xlu0 %v1726_v18, 280 }
  0xa9   :  { %239 = vbcast.lane.b32.xlu1 %v1756_v29, 272  ;;  %205 = vbcast.lane.b32.xlu0 %v1732_v20, 280 }
  0xab   :  { %v118_v2 = vpop.permute.xlu1 %117  ;;  %v99_v4 = vpop.permute.xlu0 %98 }
  0xac   :  { %v627_v5 = vsel %vm563_vm2, %v118_v2, 0.0  ;;  %v1126_v6 = vsel %vm1062_vm3, %v118_v2, 0.0  ;;  %v623_v7 = vsel %vm559_vm0, %v99_v4, 0.0  ;;  %v1122_v8 = vsel %vm1058_vm1, %v99_v4, 0.0 }
  0xad   :  { %391 = vbcast.lane.b32.xlu1 %v1773_v35, 272  ;;  %357 = vbcast.lane.b32.xlu0 %v1737_v21, 280  ;;  %v701_v14 = vsel %vm77_vm6, %v627_v5, 0.0  ;;  %v1199_v15 = vsel %vm77_vm6, %v1126_v6, 0.0  ;;  %v688_v16 = vsel %vm77_vm6, %v623_v7, 0.0  ;;  %v1186_v17 = vsel %vm77_vm6, %v1122_v8, 0.0 }
  0xae   :  { %vm1094_vm0 = vcmp.eq.s32.totalorder %v1851_v61, %v1701_v1  ;;  %vm568_vm1 = vcmp.eq.s32.totalorder %v1880_v9, %v1811_v54  ;;  %vm1067_vm2 = vcmp.eq.s32.totalorder %v1888_v11, %v1811_v54  ;;  %vm567_vm3 = vcmp.eq.s32.totalorder %v1880_v9, %v1701_v1 }
  0xaf   :  { %v122_v18 = vpop.permute.xlu1 %121  ;;  %v103_v19 = vpop.permute.xlu0 %102 }
  0xb0   :  { %v628_v20 = vsel %vm564_vm7, %v122_v18, 0.0  ;;  %v1127_v21 = vsel %vm1063_vm9, %v122_v18, 0.0  ;;  %v624_v22 = vsel %vm560_vm4, %v103_v19, 0.0  ;;  %v1123_v25 = vsel %vm1059_vm5, %v103_v19, 0.0 }
  0xb1   :  { %v702_v26 = vsel %vm77_vm6, %v628_v20, 0.0  ;;  %v1200_v27 = vsel %vm77_vm6, %v1127_v21, 0.0  ;;  %v689_v28 = vsel %vm77_vm6, %v624_v22, 0.0  ;;  %v1187_v33 = vsel %vm77_vm6, %v1123_v25, 0.0  ;;  %376 = vbcast.lane.b32.xlu1 %v1749_v24, 280  ;;  %224 = vbcast.lane.b32.xlu0 %v1743_v23, 280 }
  0xb2   :  { %v1918_v34 = vadd.f32 %v702_v26, %v701_v14  ;;  %v1920_v37 = vadd.f32 %v1200_v27, %v1199_v15  ;;  %v1922_v38 = vadd.f32 %v689_v28, %v688_v16  ;;  %v1924_v40 = vadd.f32 %v1187_v33, %v1186_v17 }
  0xb3   :  { %v255_v41 = vpop.permute.xlu1 %254  ;;  %v251_v42 = vpop.permute.xlu0 %250  ;;  %vm1066_vm4 = vcmp.eq.s32.totalorder %v1888_v11, %v1701_v1  ;;  %vm600_vm5 = vcmp.eq.s32.totalorder %v1891_v12, %v1811_v54  ;;  %vm1099_vm7 = vcmp.eq.s32.totalorder %v1894_v13, %v1811_v54  ;;  %vm1098_vm9 = vcmp.eq.s32.totalorder %v1894_v13, %v1701_v1 }
  0xb4   :  { %v656_v23 = vsel %vm592_vm8, %v255_v41, 0.0  ;;  %v1155_v24 = vsel %vm1091_vm10, %v255_v41, 0.0  ;;  %v655_v43 = vsel %vm591_vm11, %v251_v42, 0.0  ;;  %v1154_v46 = vsel %vm1090_vm12, %v251_v42, 0.0 }
  0xb5   :  { %v793_v47 = vsel %vm77_vm6, %v656_v23, 0.0  ;;  %v1291_v48 = vsel %vm77_vm6, %v1155_v24, 0.0  ;;  %v792_v51 = vsel %vm77_vm6, %v655_v43, 0.0  ;;  %v1290_v60 = vsel %vm77_vm6, %v1154_v46, 0.0  ;;  %395 = vbcast.lane.b32.xlu1 %v1773_v35, 280  ;;  %243 = vbcast.lane.b32.xlu0 %v1756_v29, 280 }
  0xb6   :  { %v1952_v62 = vadd.f32 %v793_v47, %v792_v51  ;;  %v1954_v63 = vadd.f32 %v1291_v48, %v1290_v60  ;;  %vm599_vm8 = vcmp.eq.s32.totalorder %v1891_v12, %v1701_v1  ;;  %v444_v29 = vcombine.high %v1788_v44, %v1788_v44 }
  0xb7   :  { %v274_v0 = vpop.permute.xlu1 %273  ;;  %v270_v2 = vpop.permute.xlu0 %269  ;;  %vm565_vm10 = vcmp.eq.s32.totalorder %v1804_v52, %v1883_v10  ;;  %vm1064_vm11 = vcmp.eq.s32.totalorder %v1808_v53, %v1883_v10  ;;  %vm561_vm12 = vcmp.eq.s32.totalorder %v1796_v49, %v1883_v10  ;;  %v943_v17 = vcombine.high %v1791_v45, %v1791_v45 }
  0xb8   :  { %v660_v35 = vsel %vm596_vm13, %v274_v0, 0.0  ;;  %v1159_v4 = vsel %vm1095_vm15, %v274_v0, 0.0  ;;  %v659_v5 = vsel %vm595_vm14, %v270_v2, 0.0  ;;  %v1158_v6 = vsel %vm1094_vm0, %v270_v2, 0.0 }
  0xb9   :  { %v806_v7 = vsel %vm77_vm6, %v660_v35, 0.0  ;;  %v1304_v44 = vsel %vm77_vm6, %v1159_v4, 0.0  ;;  %v805_v8 = vsel %vm77_vm6, %v659_v5, 0.0  ;;  %v1303_v14 = vsel %vm77_vm6, %v1158_v6, 0.0 }
  0xba   :  { %vm1060_vm13 = vcmp.eq.s32.totalorder %v1799_v50, %v1883_v10  ;;  %v1992_v15 = vadd.f32 %v806_v7, %v805_v8  ;;  %v1994_v16 = vadd.f32 %v1304_v44, %v1303_v14  ;;  %v493_v18 = vcombine.high %v1819_v56, %v1819_v56 }
  0xbb   :  { %v141_v19 = vpop.permute.xlu1 %140  ;;  %v137_v20 = vpop.permute.xlu0 %136  ;;  %v2001_v21 = vrot.slane %v444_v29, %v1705_v3  ;;  %v992_v22 = vcombine.high %v1822_v57, %v1822_v57  ;;  %v397_v25 = vcombine.high %v1763_v31, %v1763_v31  ;;  %v896_v26 = vcombine.high %v1765_v32, %v1765_v32 }
  0xbc   :  { %v632_v45 = vsel %vm568_vm1, %v141_v19, 0.0  ;;  %v1131_v56 = vsel %vm1067_vm2, %v141_v19, 0.0  ;;  %v631_v27 = vsel %vm567_vm3, %v137_v20, 0.0  ;;  %v1130_v57 = vsel %vm1066_vm4, %v137_v20, 0.0 }
  0xbd   :  { %v715_v31 = vsel %vm77_vm6, %v632_v45, 0.0  ;;  %v1213_v32 = vsel %vm77_vm6, %v1131_v56, 0.0  ;;  %v714_v28 = vsel %vm77_vm6, %v631_v27, 0.0  ;;  %v1212_v33 = vsel %vm77_vm6, %v1130_v57, 0.0 }
  0xbe   :  { %v2025_v41 = vadd.f32 %v715_v31, %v714_v28  ;;  %v2027_v42 = vadd.f32 %v1213_v32, %v1212_v33  ;;  %v2030_v23 = vrot.slane %v943_v17, %v1705_v3  ;;  %v2033_v24 = vrot.slane %v493_v18, %v1705_v3 }
  0xbf   :  { %v293_v43 = vpop.permute.xlu1 %292  ;;  %v289_v46 = vpop.permute.xlu0 %288  ;;  %vm572_vm14 = vcmp.eq.s32.totalorder %v2001_v21, %v1811_v54  ;;  %v2038_v47 = vrot.slane %v992_v22, %v1705_v3  ;;  %v2041_v48 = vrot.slane %v397_v25, %v1759_v30  ;;  %v2044_v51 = vrot.slane %v896_v26, %v1759_v30 }
  0xc0   :  { %3080 = vst [vmem:[#allocation16_spill] sm:$0xff] %v2030_v23  ;;  %v664_v60 = vsel %vm600_vm5, %v293_v43, 0.0  ;;  %v1163_v0 = vsel %vm1099_vm7, %v293_v43, 0.0  ;;  %v663_v2 = vsel %vm599_vm8, %v289_v46, 0.0  ;;  %v1162_v29 = vsel %vm1098_vm9, %v289_v46, 0.0 }
  0xc1   :  { %v819_v35 = vsel %vm77_vm6, %v664_v60, 0.0  ;;  %v1317_v4 = vsel %vm77_vm6, %v1163_v0, 0.0  ;;  %v818_v5 = vsel %vm77_vm6, %v663_v2, 0.0  ;;  %v1316_v6 = vsel %vm77_vm6, %v1162_v29, 0.0 }
  0xc2   :  { %vm597_vm15 = vcmp.eq.s32.totalorder %v1847_v59, %v1883_v10  ;;  %vm1096_vm0 = vcmp.eq.s32.totalorder %v1851_v61, %v1883_v10  ;;  %vm593_vm1 = vcmp.eq.s32.totalorder %v1816_v55, %v1883_v10  ;;  %vm1092_vm2 = vcmp.eq.s32.totalorder %v1829_v58, %v1883_v10 }
  0xc3   :  { %v2070_v7 = vadd.f32 %v819_v35, %v818_v5  ;;  %v2072_v44 = vadd.f32 %v1317_v4, %v1316_v6  ;;  %vm1071_vm3 = vcmp.eq.s32.totalorder %v2030_v23, %v1811_v54  ;;  %vm571_vm4 = vcmp.eq.s32.totalorder %v2001_v21, %v1701_v1  ;;  %v126_v8 = vpop.permute.xlu1 %125  ;;  %v107_v14 = vpop.permute.xlu0 %106 }
  0xc4   :  { %vm1070_vm5 = vcmp.eq.s32.totalorder %v2030_v23, %v1701_v1  ;;  %v2082_v17 = vrot.slane %v2041_v48, %v1759_v30  ;;  %v2086_v18 = vrot.slane %v2044_v51, %v1759_v30  ;;  %v446_v19 = vcombine.high %v1775_v36, %v1775_v36 }
  0xc5   :  { %v629_v20 = vsel %vm565_vm10, %v126_v8, 0.0  ;;  %v1128_v22 = vsel %vm1064_vm11, %v126_v8, 0.0  ;;  %v625_v25 = vsel %vm561_vm12, %v107_v14, 0.0  ;;  %v1124_v26 = vsel %vm1060_vm13, %v107_v14, 0.0 }
  0xc6   :  { %v704_v45 = vsel %vm77_vm6, %v629_v20, 0.0  ;;  %v1202_v36 = vsel %vm77_vm6, %v1128_v22, 0.0  ;;  %v691_v56 = vsel %vm77_vm6, %v625_v25, 0.0  ;;  %v1189_v27 = vsel %vm77_vm6, %v1124_v26, 0.0 }
  0xc7   :  { %vm604_vm7 = vcmp.eq.s32.totalorder %v2033_v24, %v1811_v54  ;;  %vm1103_vm8 = vcmp.eq.s32.totalorder %v2038_v47, %v1811_v54  ;;  %vm603_vm9 = vcmp.eq.s32.totalorder %v2033_v24, %v1701_v1  ;;  %vm1102_vm10 = vcmp.eq.s32.totalorder %v2038_v47, %v1701_v1  ;;  %v160_v33 = vpop.permute.xlu1 %159  ;;  %v156_v43 = vpop.permute.xlu0 %155 }
  0xc8   :  { %v2115_v57 = vadd.f32 %v704_v45, %v1918_v34  ;;  %v2118_v31 = vadd.f32 %v1202_v36, %v1920_v37  ;;  %v2121_v32 = vadd.f32 %v691_v56, %v1922_v38  ;;  %v2124_v28 = vadd.f32 %v1189_v27, %v1924_v40 }
  0xc9   :  { %v2128_v46 = vrot.slane %v2082_v17, %v1705_v3  ;;  %v2132_v60 = vrot.slane %v2086_v18, %v1705_v3  ;;  %v2135_v34 = vrot.slane %v446_v19, %v1759_v30  ;;  %v945_v37 = vcombine.high %v1777_v39, %v1777_v39 }
  0xca   :  { %v636_v38 = vsel %vm572_vm14, %v160_v33, 0.0  ;;  %v1135_v40 = vsel %vm1071_vm3, %v160_v33, 0.0  ;;  %v635_v0 = vsel %vm571_vm4, %v156_v43, 0.0  ;;  %v1134_v2 = vsel %vm1070_vm5, %v156_v43, 0.0 }
  0xcb   :  { %v728_v29 = vsel %vm77_vm6, %v636_v38, 0.0  ;;  %v1226_v39 = vsel %vm77_vm6, %v1135_v40, 0.0  ;;  %v727_v35 = vsel %vm77_vm6, %v635_v0, 0.0  ;;  %v1225_v4 = vsel %vm77_vm6, %v1134_v2, 0.0  ;;  %v278_v8 = vpop.permute.xlu1 %277  ;;  %v259_v14 = vpop.permute.xlu0 %258 }
  0xcc   :  { %vm569_vm11 = vcmp.eq.s32.totalorder %v1880_v9, %v1883_v10  ;;  %v2157_v5 = vadd.f32 %v728_v29, %v727_v35  ;;  %v2159_v6 = vadd.f32 %v1226_v39, %v1225_v4  ;;  %vm1068_vm12 = vcmp.eq.s32.totalorder %v1888_v11, %v1883_v10 }
  0xcd   :  { %vm575_vm13 = vcmp.eq.s32.totalorder %v2128_v46, %v1701_v1  ;;  %vm1074_vm14 = vcmp.eq.s32.totalorder %v2132_v60, %v1701_v1  ;;  %v2169_v19 = vrot.slane %v2135_v34, %v1759_v30  ;;  %v959_v20 = vrot.slane %v945_v37, %v1759_v30 }
  0xce   :  { %v1650_v22 = vmov 0.0   ;;  %v661_v25 = vsel %vm597_vm15, %v278_v8, 0.0  ;;  %v1160_v26 = vsel %vm1096_vm0, %v278_v8, 0.0  ;;  %v657_v45 = vsel %vm593_vm1, %v259_v14, 0.0 }
  0xcf   :  { %79 = vst.msk [vmem:[#allocation2 + $0x8] sm:$0xff] %vm77_vm6, %v1650_v22  ;;  %78 = vst.msk [vmem:[#allocation2] sm:$0xff] %vm77_vm6, %v1650_v22  ;;  %v1156_v36 = vsel %vm1092_vm2, %v259_v14, 0.0  ;;  %v808_v56 = vsel %vm77_vm6, %v661_v25, 0.0  ;;  %v1306_v27 = vsel %vm77_vm6, %v1160_v26, 0.0  ;;  %v795_v33 = vsel %vm77_vm6, %v657_v45, 0.0  ;;  %v312_v2 = vpop.permute.xlu1 %311  ;;  %v308_v29 = vpop.permute.xlu0 %307 }
  0xd0   :  { %v1293_v43 = vsel %vm77_vm6, %v1156_v36, 0.0  ;;  %vm601_vm15 = vcmp.eq.s32.totalorder %v1891_v12, %v1883_v10  ;;  %vm1100_vm0 = vcmp.eq.s32.totalorder %v1894_v13, %v1883_v10  ;;  %vm576_vm1 = vcmp.eq.s32.totalorder %v2128_v46, %v1811_v54 }
  0xd1   :  { %v2197_v37 = vadd.f32 %v808_v56, %v1992_v15  ;;  %v2200_v38 = vadd.f32 %v1306_v27, %v1994_v16  ;;  %v2203_v40 = vadd.f32 %v795_v33, %v1952_v62  ;;  %v2206_v0 = vadd.f32 %v1293_v43, %v1954_v63 }
  0xd2   :  { %vm1075_vm2 = vcmp.eq.s32.totalorder %v2132_v60, %v1811_v54  ;;  %v2212_v39 = vrot.slane %v2169_v19, %v1705_v3  ;;  %v2215_v15 = vrot.slane %v959_v20, %v1759_v30  ;;  %v413_v16 = vcombine.high %v2041_v48, %v2041_v48 }
  0xd3   :  { %v668_v62 = vsel %vm604_vm7, %v312_v2, 0.0  ;;  %v1167_v63 = vsel %vm1103_vm8, %v312_v2, 0.0  ;;  %v667_v35 = vsel %vm603_vm9, %v308_v29, 0.0  ;;  %v1166_v4 = vsel %vm1102_vm10, %v308_v29, 0.0  ;;  %v175_v56 = vpop.permute.xlu1 %174  ;;  %v145_v27 = vpop.permute.xlu0 %144 }
  0xd4   :  { %v832_v8 = vsel %vm77_vm6, %v668_v62, 0.0  ;;  %v1330_v48 = vsel %vm77_vm6, %v1167_v63, 0.0  ;;  %v831_v14 = vsel %vm77_vm6, %v667_v35, 0.0  ;;  %v1329_v22 = vsel %vm77_vm6, %v1166_v4, 0.0 }
  0xd5   :  { %v2235_v25 = vadd.f32 %v832_v8, %v831_v14  ;;  %v2237_v26 = vadd.f32 %v1330_v48, %v1329_v22  ;;  %v912_v45 = vcombine.high %v2044_v51, %v2044_v51  ;;  %v462_v36 = vcombine.high %v2135_v34, %v2135_v34 }
  0xd6   :  { %vm608_vm3 = vcmp.eq.s32.totalorder %v2212_v39, %v1811_v54  ;;  %v2247_v33 = vrot.slane %v2215_v15, %v1705_v3  ;;  %vm607_vm4 = vcmp.eq.s32.totalorder %v2212_v39, %v1701_v1  ;;  %v961_v43 = vcombine.high %v959_v20, %v959_v20 }
  0xd7   :  { %v639_v51 = vsel %vm575_vm13, %v175_v56, 0.0  ;;  %v1138_v34 = vsel %vm1074_vm14, %v175_v56, 0.0  ;;  %v633_v2 = vsel %vm569_vm11, %v145_v27, 0.0  ;;  %v1132_v29 = vsel %vm1068_vm12, %v145_v27, 0.0  ;;  %v297_v27 = vpop.permute.xlu1 %296 }
  0xd8   :  { %3081 = vst [vmem:[#allocation17_spill] sm:$0xff] %v2247_v33  ;;  %v717_v62 = vsel %vm77_vm6, %v633_v2, 0.0  ;;  %v1215_v20 = vsel %vm77_vm6, %v1132_v29, 0.0  ;;  %v2266_v63 = vadd.s32 24, %v1701_v1  ;;  %v2269_v35 = vrot.slane %v413_v16, %v1759_v30  ;;  %v179_v2 = vpop.permute.xlu0 %178 }
  0xd9   :  { %v2272_v4 = vadd.f32 %v717_v62, %v2025_v41  ;;  %v2275_v8 = vadd.f32 %v1215_v20, %v2027_v42  ;;  %v2278_v48 = vrot.slane %v912_v45, %v1759_v30  ;;  %v2281_v14 = vrot.slane %v462_v36, %v1759_v30 }
  0xda   :  { %v740_v22 = vsel %vm77_vm6, %v639_v51, 0.0  ;;  %v1238_v56 = vsel %vm77_vm6, %v1138_v34, 0.0  ;;  %v2286_v16 = vrot.slane %v961_v43, %v1759_v30  ;;  %v443_v41 = vcombine.high %v2082_v17, %v2082_v17 }
  0xdb   :  { %3082 = vst [vmem:[#allocation18_spill] sm:$0xff] %v2275_v8  ;;  %v665_v42 = vsel %vm601_vm15, %v297_v27, 0.0  ;;  %v1164_v45 = vsel %vm1100_vm0, %v297_v27, 0.0  ;;  %v640_v36 = vsel %vm576_vm1, %v179_v2, 0.0  ;;  %v1139_v30 = vsel %vm1075_vm2, %v179_v2, 0.0  ;;  %v2316_v8 = vpop.permute.xlu1 %330 }
  0xdc   :  { %v821_v43 = vsel %vm77_vm6, %v665_v42, 0.0  ;;  %v1319_v17 = vsel %vm77_vm6, %v1164_v45, 0.0  ;;  %v741_v51 = vsel %vm77_vm6, %v640_v36, 0.0  ;;  %v1239_v34 = vsel %vm77_vm6, %v1139_v30, 0.0  ;;  %v2318_v2 = vpop.permute.xlu0 %326 }
  0xdd   :  { %v2307_v29 = vadd.f32 %v821_v43, %v2070_v7  ;;  %v2310_v62 = vadd.f32 %v1319_v17, %v2072_v44  ;;  %v2312_v20 = vadd.f32 %v741_v51, %v740_v22  ;;  %v2314_v27 = vadd.f32 %v1239_v34, %v1238_v56 }
  0xde   :  { %vm566_vm5 = vcmp.eq.s32.totalorder %v1804_v52, %v2266_v63  ;;  %vm1065_vm7 = vcmp.eq.s32.totalorder %v1808_v53, %v2266_v63  ;;  %vm562_vm8 = vcmp.eq.s32.totalorder %v1796_v49, %v2266_v63  ;;  %vm1061_vm9 = vcmp.eq.s32.totalorder %v1799_v50, %v2266_v63 }
  0xdf   :  { %3083 = vst [vmem:[#allocation19_spill] sm:$0xff] %v2307_v29  ;;  %3084 = vst [vmem:[#allocation20_spill] sm:$0xff] %v2310_v62  ;;  %vm1107_vm10 = vcmp.eq.s32.totalorder %v2247_v33, %v1811_v54  ;;  %v672_v7 = vsel %vm608_vm3, %v2316_v8, 0.0  ;;  %vm1106_vm11 = vcmp.eq.s32.totalorder %v2247_v33, %v1701_v1  ;;  %v671_v44 = vsel %vm607_vm4, %v2318_v2, 0.0  ;;  %v130_v34 = vpop.permute.xlu1 %129 }
  0xe0   :  { %3085 = vst [vmem:[#allocation21_spill] sm:$0xff] %v2312_v20  ;;  %3086 = vst [vmem:[#allocation22_spill] sm:$0xff] %v2314_v27  ;;  %v2342_v22 = vrot.slane %v2269_v35, %v1705_v3  ;;  %v2346_v56 = vrot.slane %v2278_v48, %v1705_v3  ;;  %v845_v42 = vsel %vm77_vm6, %v672_v7, 0.0  ;;  %v844_v45 = vsel %vm77_vm6, %v671_v44, 0.0  ;;  %v111_v7 = vpop.permute.xlu0 %110 }
  0xe1   :  { %vm573_vm12 = vcmp.eq.s32.totalorder %v2001_v21, %v1883_v10  ;;  %v2354_v36 = vrot.slane %v2281_v14, %v1705_v3  ;;  %v2356_v30 = vadd.f32 %v845_v42, %v844_v45  ;;  %vm594_vm13 = vcmp.eq.s32.totalorder %v1816_v55, %v2266_v63 }
  0xe2   :  { %vm1093_vm14 = vcmp.eq.s32.totalorder %v1829_v58, %v2266_v63  ;;  %v2364_v43 = vrot.slane %v2286_v16, %v1705_v3  ;;  %v2367_v17 = vrot.slane %v443_v41, %v1705_v3  ;;  %v942_v51 = vcombine.high %v2086_v18, %v2086_v18 }
  0xe3   :  { %3087 = vst [vmem:[#allocation23_spill] sm:$0xff] %v2356_v30  ;;  %v492_v44 = vcombine.high %v2169_v19, %v2169_v19  ;;  %v991_v42 = vcombine.high %v2215_v15, %v2215_v15  ;;  %v445_v45 = vcombine.high %v2269_v35, %v2269_v35  ;;  %v944_v30 = vcombine.high %v2278_v48, %v2278_v48  ;;  %v2403_v50 = vpop.permute.xlu1 %193 }
  0xe4   :  { %v630_v41 = vsel %vm566_vm5, %v130_v34, 0.0  ;;  %v1129_v18 = vsel %vm1065_vm7, %v130_v34, 0.0  ;;  %v626_v19 = vsel %vm562_vm8, %v111_v7, 0.0  ;;  %v1125_v15 = vsel %vm1061_vm9, %v111_v7, 0.0  ;;  %v164_v7 = vpop.permute.xlu0 %163 }
  0xe5   :  { %v706_v35 = vsel %vm77_vm6, %v630_v41, 0.0  ;;  %v1204_v48 = vsel %vm77_vm6, %v1129_v18, 0.0  ;;  %v693_v27 = vsel %vm77_vm6, %v626_v19, 0.0  ;;  %v1191_v52 = vsel %vm77_vm6, %v1125_v15, 0.0 }
  0xe6   :  { %v707_v20 = vadd.f32 %v706_v35, %v2115_v57  ;;  %v1205_v53 = vadd.f32 %v1204_v48, %v2118_v31  ;;  %v694_v34 = vadd.f32 %v693_v27, %v2121_v32  ;;  %v1192_v49 = vadd.f32 %v1191_v52, %v2124_v28 }
  0xe7   :  { %vm579_vm15 = vcmp.eq.s32.totalorder %v2342_v22, %v1701_v1  ;;  %vm1072_vm0 = vcmp.eq.s32.totalorder %v2030_v23, %v1883_v10  ;;  %v2406_v41 = vrot.slane %v942_v51, %v1705_v3  ;;  %v2409_v57 = vrot.slane %v492_v44, %v1705_v3 }
  0xe8   :  { %v2412_v31 = vrot.slane %v991_v42, %v1705_v3  ;;  %v494_v32 = vcombine.high %v2281_v14, %v2281_v14  ;;  %v708_v28 = vrot.slane %v707_v20, 4  ;;  %v1206_v27 = vrot.slane %v1205_v53, 4 }
  0xe9   :  { %v695_v18 = vrot.slane %v694_v34, 4  ;;  %v1193_v19 = vrot.slane %v1192_v49, 4  ;;  %vm1078_vm1 = vcmp.eq.s32.totalorder %v2346_v56, %v1701_v1  ;;  %vm1412_vm2 = vcmask 1041409  }
  0xea   :  { %v637_v51 = vsel %vm573_vm12, %v164_v7, 0.0  ;;  %v2422_v44 = vrot.slane %v445_v45, %v1705_v3  ;;  %v2425_v42 = vrot.slane %v944_v30, %v1705_v3  ;;  %v993_v14 = vcombine.high %v2286_v16, %v2286_v16  ;;  %v263_v30 = vpop.permute.xlu1 %262 }
  0xeb   :  { %v709_v15 = vadd.f32 %v708_v28, %v707_v20  ;;  %v1207_v35 = vadd.f32 %v1206_v27, %v1205_v53  ;;  %v696_v48 = vadd.f32 %v695_v18, %v694_v34  ;;  %v1194_v52 = vadd.f32 %v1193_v19, %v1192_v49  ;;  %v198_v53 = vpop.permute.xlu0 %197 }
  0xec   :  { %3088 = vst [vmem:[#allocation24_spill] sm:$0xff] %v2422_v44  ;;  %3089 = vst [vmem:[#allocation25_spill] sm:$0xff] %v2425_v42  ;;  %vm580_vm3 = vcmp.eq.s32.totalorder %v2342_v22, %v1811_v54  ;;  %vm1079_vm4 = vcmp.eq.s32.totalorder %v2346_v56, %v1811_v54  ;;  %v1171_v45 = vsel %vm1107_vm10, %v2316_v8, 0.0  ;;  %v1170_v16 = vsel %vm1106_vm11, %v2318_v2, 0.0 }
  0xed   :  { %v730_v20 = vsel %vm77_vm6, %v637_v51, 0.0  ;;  %vm605_vm5 = vcmp.eq.s32.totalorder %v2033_v24, %v1883_v10  ;;  %vm1104_vm7 = vcmp.eq.s32.totalorder %v2038_v47, %v1883_v10  ;;  %vm598_vm8 = vcmp.eq.s32.totalorder %v1847_v59, %v2266_v63 }
  0xee   :  { %vm1097_vm9 = vcmp.eq.s32.totalorder %v1851_v61, %v2266_v63  ;;  %v2451_v8 = vrot.slane %v494_v32, %v1705_v3  ;;  %v710_v2 = vrot.slane %v709_v15, 2  ;;  %v1208_v34 = vrot.slane %v1207_v35, 2 }
  0xef   :  { %v697_v49 = vrot.slane %v696_v48, 2  ;;  %v1195_v28 = vrot.slane %v1194_v52, 2  ;;  %v2454_v27 = vadd.f32 %v730_v20, %v2157_v5  ;;  %v658_v18 = vsel %vm594_vm13, %v263_v30, 0.0  ;;  %v282_v29 = vpop.permute.xlu0 %281 }
  0xf0   :  { %3090 = vst [vmem:[#allocation26_spill] sm:$0xff] %v2451_v8  ;;  %v1157_v19 = vsel %vm1093_vm14, %v263_v30, 0.0  ;;  %v2463_v51 = vrot.slane %v993_v14, %v1705_v3  ;;  %v711_v32 = vadd.f32 %v710_v2, %v709_v15  ;;  %v1209_v8 = vadd.f32 %v1208_v34, %v1207_v35 }
  0xf1   :  { %3091 = vst [vmem:[#allocation27_spill] sm:$0xff] %v2454_v27  ;;  %v698_v42 = vadd.f32 %v697_v49, %v696_v48  ;;  %v1196_v44 = vadd.f32 %v1195_v28, %v1194_v52  ;;  %v1343_v62 = vsel %vm77_vm6, %v1171_v45, 0.0  ;;  %v1342_v5 = vsel %vm77_vm6, %v1170_v16, 0.0  ;;  %v316_v27 = vpop.permute.xlu1 %315 }
  0xf2   :  { %3092 = vst [vmem:[#allocation28_spill] sm:$0xff] %v2463_v51  ;;  %v797_v20 = vsel %vm77_vm6, %v658_v18, 0.0  ;;  %v1295_v55 = vsel %vm77_vm6, %v1157_v19, 0.0  ;;  %vm612_vm10 = vcmp.eq.s32.totalorder %v2354_v36, %v1811_v54  ;;  %vm1111_vm11 = vcmp.eq.s32.totalorder %v2364_v43, %v1811_v54 }
  0xf3   :  { %v712_v3 = vrot.slane %v711_v32, 1  ;;  %v1210_v58 = vrot.slane %v1209_v8, 1  ;;  %v699_v14 = vrot.slane %v698_v42, 1  ;;  %v1197_v15 = vrot.slane %v1196_v44, 1  ;;  %v346_v23 = vpop.permute.xlu0 %345 }
  0xf4   :  { %vm611_vm12 = vcmp.eq.s32.totalorder %v2354_v36, %v1701_v1  ;;  %vm1110_vm13 = vcmp.eq.s32.totalorder %v2364_v43, %v1701_v1  ;;  %v643_v35 = vsel %vm579_vm15, %v2403_v50, 0.0  ;;  %v1136_v48 = vsel %vm1072_vm0, %v164_v7, 0.0 }
  0xf5   :  { %v798_v52 = vadd.f32 %v797_v20, %v2203_v40  ;;  %v1296_v45 = vadd.f32 %v1295_v55, %v2206_v0  ;;  %v713_v16 = vadd.f32 %v712_v3, %v711_v32  ;;  %v1211_v30 = vadd.f32 %v1210_v58, %v1209_v8  ;;  %v350_v51 = vpop.permute.xlu1 %349 }
  0xf6   :  { %v700_v2 = vadd.f32 %v699_v14, %v698_v42  ;;  %v1198_v34 = vadd.f32 %v1197_v15, %v1196_v44  ;;  %v2486_v49 = vadd.f32 %v1343_v62, %v1342_v5  ;;  %v1142_v28 = vsel %vm1078_vm1, %v2403_v50, 0.0 }
  0xf7   :  { %v799_v18 = vrot.slane %v798_v52, 4  ;;  %v1297_v19 = vrot.slane %v1296_v45, 4  ;;  %v753_v0 = vsel %vm77_vm6, %v643_v35, 0.0  ;;  %v1228_v62 = vsel %vm77_vm6, %v1136_v48, 0.0  ;;  %v149_v15 = vpop.permute.xlu0 %148 }
  0xf8   :  { %v2493_v7 = vsel %vm1412_vm2, %v713_v16, %v700_v2  ;;  %v2496_v40 = vsel %vm1412_vm2, %v1211_v30, %v1198_v34  ;;  %vm570_vm14 = vcmp.eq.s32.totalorder %v1880_v9, %v2266_v63  ;;  %vm1069_vm15 = vcmp.eq.s32.totalorder %v1888_v11, %v2266_v63  ;;  %v3095_v9 = vld [vmem:[#allocation18_spill] sm:$0xff] }
  0xf9   :  { %v800_v50 = vadd.f32 %v799_v18, %v798_v52  ;;  %v1298_v44 = vadd.f32 %v1297_v19, %v1296_v45  ;;  %v644_v42 = vsel %vm580_vm3, %v198_v53, 0.0  ;;  %v1143_v8 = vsel %vm1079_vm4, %v198_v53, 0.0 }
  0xfa   :  { %v669_v32 = vsel %vm605_vm5, %v316_v27, 0.0  ;;  %v1168_v5 = vsel %vm1104_vm7, %v316_v27, 0.0  ;;  %v662_v20 = vsel %vm598_vm8, %v282_v29, 0.0  ;;  %v1161_v55 = vsel %vm1097_vm9, %v282_v29, 0.0  ;;  %v183_v27 = vpop.permute.xlu1 %182 }
  0xfb   :  { %v801_v3 = vrot.slane %v800_v50, 2  ;;  %v1299_v58 = vrot.slane %v1298_v44, 2  ;;  %v810_v53 = vsel %vm77_vm6, %v662_v20, 0.0  ;;  %v1308_v14 = vsel %vm77_vm6, %v1161_v55, 0.0 }
  0xfc   :  { %vm577_vm0 = vcmp.eq.s32.totalorder %v2128_v46, %v1883_v10  ;;  %vm1076_vm1 = vcmp.eq.s32.totalorder %v2132_v60, %v1883_v10  ;;  %v1251_v59 = vsel %vm77_vm6, %v1142_v28, 0.0  ;;  %v2530_v35 = vadd.f32 %v1228_v62, %v2159_v6  ;;  %v2554_v62 = vpop.permute.xlu0 %212 }
  0xfd   :  { %v811_v61 = vadd.f32 %v810_v53, %v2197_v37  ;;  %v1309_v29 = vadd.f32 %v1308_v14, %v2200_v38  ;;  %vm584_vm3 = vcmp.eq.s32.totalorder %v2367_v17, %v1811_v54  ;;  %vm1083_vm4 = vcmp.eq.s32.totalorder %v2406_v41, %v1811_v54 }
  0xfe   :  { %v754_v48 = vsel %vm77_vm6, %v644_v42, 0.0  ;;  %v1252_v52 = vsel %vm77_vm6, %v1143_v8, 0.0  ;;  %v834_v45 = vsel %vm77_vm6, %v669_v32, 0.0  ;;  %v1332_v16 = vsel %vm77_vm6, %v1168_v5, 0.0  ;;  %v217_v19 = vpop.permute.xlu1 %216 }
  0xff   :  { %v812_v6 = vrot.slane %v811_v61, 4  ;;  %v1310_v30 = vrot.slane %v1309_v29, 4  ;;  %v676_v37 = vsel %vm612_vm10, %v350_v51, 0.0  ;;  %v1175_v38 = vsel %vm1111_vm11, %v350_v51, 0.0 }
 0x100   :  { %v802_v2 = vadd.f32 %v801_v3, %v800_v50  ;;  %v1300_v34 = vadd.f32 %v1299_v58, %v1298_v44  ;;  %v675_v28 = vsel %vm611_vm12, %v346_v23, 0.0  ;;  %v1174_v18 = vsel %vm1110_vm13, %v346_v23, 0.0 }
 0x101   :  { %v2556_v42 = vadd.f32 %v754_v48, %v753_v0  ;;  %v2558_v8 = vadd.f32 %v1252_v52, %v1251_v59  ;;  %v813_v32 = vadd.f32 %v812_v6, %v811_v61  ;;  %v1311_v5 = vadd.f32 %v1310_v30, %v1309_v29  ;;  %v301_v59 = vpop.permute.xlu0 %300 }
 0x102   :  { %vm583_vm5 = vcmp.eq.s32.totalorder %v2367_v17, %v1701_v1  ;;  %vm1082_vm7 = vcmp.eq.s32.totalorder %v2406_v41, %v1701_v1  ;;  %v2565_v51 = vadd.f32 %v834_v45, %v2235_v25  ;;  %v2568_v23 = vadd.f32 %v1332_v16, %v2237_v26  ;;  %v335_v14 = vpop.permute.xlu1 %334 }
 0x103   :  { %v858_v50 = vsel %vm77_vm6, %v676_v37, 0.0  ;;  %v1356_v0 = vsel %vm77_vm6, %v1175_v38, 0.0  ;;  %vm609_vm8 = vcmp.eq.s32.totalorder %v2212_v39, %v1883_v10  ;;  %vm1108_vm9 = vcmp.eq.s32.totalorder %v2247_v33, %v1883_v10 }
 0x104   :  { %vm602_vm10 = vcmp.eq.s32.totalorder %v1891_v12, %v2266_v63  ;;  %vm1101_vm11 = vcmp.eq.s32.totalorder %v1894_v13, %v2266_v63  ;;  %v814_v25 = vrot.slane %v813_v32, 2  ;;  %v1312_v44 = vrot.slane %v1311_v5, 2 }
 0x105   :  { %v857_v26 = vsel %vm77_vm6, %v675_v28, 0.0  ;;  %v1355_v20 = vsel %vm77_vm6, %v1174_v18, 0.0  ;;  %v803_v55 = vrot.slane %v802_v2, 1  ;;  %v1301_v3 = vrot.slane %v1300_v34, 1 }
 0x106   :  { %v634_v58 = vsel %vm570_vm14, %v149_v15, 0.0  ;;  %v1133_v53 = vsel %vm1069_vm15, %v149_v15, 0.0  ;;  %v815_v61 = vadd.f32 %v814_v25, %v813_v32  ;;  %v1313_v29 = vadd.f32 %v1312_v44, %v1311_v5  ;;  %v2608_v5 = vpop.permute.xlu1 %368 }
 0x107   :  { %v719_v48 = vsel %vm77_vm6, %v634_v58, 0.0  ;;  %v1217_v52 = vsel %vm77_vm6, %v1133_v53, 0.0  ;;  %v2590_v45 = vadd.f32 %v858_v50, %v857_v26  ;;  %v2592_v16 = vadd.f32 %v1356_v0, %v1355_v20  ;;  %v2610_v50 = vpop.permute.xlu0 %364  ;;  %v3096_v53 = vld [vmem:[#allocation16_spill] sm:$0xff] }
 0x108   :  { %v720_v6 = vadd.f32 %v719_v48, %v2272_v4  ;;  %v1218_v30 = vadd.f32 %v1217_v52, %v3095_v9  ;;  %v816_v37 = vrot.slane %v815_v61, 1  ;;  %v1314_v38 = vrot.slane %v1313_v29, 1 }
 0x109   :  { %3093 = vst [vmem:[#allocation29_spill] sm:$0xff] %v2590_v45  ;;  %3094 = vst [vmem:[#allocation30_spill] sm:$0xff] %v2592_v16  ;;  %v641_v11 = vsel %vm577_vm0, %v183_v27, 0.0  ;;  %v1140_v15 = vsel %vm1076_vm1, %v183_v27, 0.0  ;;  %v648_v32 = vsel %vm584_vm3, %v217_v19, 0.0  ;;  %v1147_v4 = vsel %vm1083_vm4, %v217_v19, 0.0 }
 0x10a   :  { %v721_v28 = vrot.slane %v720_v6, 4  ;;  %v1219_v18 = vrot.slane %v1218_v30, 4  ;;  %v804_v0 = vadd.f32 %v803_v55, %v802_v2  ;;  %v1302_v25 = vadd.f32 %v1301_v3, %v1300_v34 }
 0x10b   :  { %v817_v44 = vadd.f32 %v816_v37, %v815_v61  ;;  %v1315_v26 = vadd.f32 %v1314_v38, %v1313_v29  ;;  %vm1414_vm12 = vcmask 1042434   ;;  %vm616_vm13 = vcmp.eq.s32.totalorder %v2409_v57, %v1811_v54  ;;  %v168_v9 = vpop.permute.xlu0 %167 }
 0x10c   :  { %vm1115_vm14 = vcmp.eq.s32.totalorder %v2412_v31, %v1811_v54  ;;  %v743_v27 = vsel %vm77_vm6, %v641_v11, 0.0  ;;  %v1241_v20 = vsel %vm77_vm6, %v1140_v15, 0.0  ;;  %v722_v19 = vadd.f32 %v721_v28, %v720_v6  ;;  %v202_v6 = vpop.permute.xlu1 %201 }
 0x10d   :  { %v1220_v58 = vadd.f32 %v1219_v18, %v1218_v30  ;;  %vm615_vm15 = vcmp.eq.s32.totalorder %v2409_v57, %v1701_v1  ;;  %v2623_v2 = vsel %vm1412_vm2, %v817_v44, %v804_v0  ;;  %v2626_v34 = vsel %vm1412_vm2, %v1315_v26, %v1302_v25  ;;  %v3097_v0 = vld [vmem:[#allocation19_spill] sm:$0xff]  ;;  %v3098_v25 = vld [vmem:[#allocation20_spill] sm:$0xff] }
 0x10e   :  { %v767_v55 = vsel %vm77_vm6, %v648_v32, 0.0  ;;  %v1265_v3 = vsel %vm77_vm6, %v1147_v4, 0.0  ;;  %vm581_vm1 = vcmp.eq.s32.totalorder %v2342_v22, %v1883_v10  ;;  %vm1080_vm3 = vcmp.eq.s32.totalorder %v2346_v56, %v1883_v10 }
 0x10f   :  { %vm574_vm4 = vcmp.eq.s32.totalorder %v2001_v21, %v2266_v63  ;;  %vm1073_vm0 = vcmp.eq.s32.totalorder %v3096_v53, %v2266_v63  ;;  %v723_v61 = vrot.slane %v722_v19, 2  ;;  %v1221_v29 = vrot.slane %v1220_v58, 2 }
 0x110   :  { %v647_v48 = vsel %vm583_vm5, %v2554_v62, 0.0  ;;  %v1146_v52 = vsel %vm1082_vm7, %v2554_v62, 0.0  ;;  %v673_v30 = vsel %vm609_vm8, %v335_v14, 0.0  ;;  %v1172_v37 = vsel %vm1108_vm9, %v335_v14, 0.0 }
 0x111   :  { %v666_v38 = vsel %vm602_vm10, %v301_v59, 0.0  ;;  %v1165_v11 = vsel %vm1101_vm11, %v301_v59, 0.0  ;;  %v724_v15 = vadd.f32 %v723_v61, %v722_v19  ;;  %v1222_v62 = vadd.f32 %v1221_v29, %v1220_v58  ;;  %v3099_v59 = vld [vmem:[#allocation24_spill] sm:$0xff]  ;;  %v3100_v19 = vld [vmem:[#allocation25_spill] sm:$0xff]  ;;  %v236_v58 = vpop.permute.xlu1 %235 }
 0x112   :  { %v823_v28 = vsel %vm77_vm6, %v666_v38, 0.0  ;;  %v1321_v18 = vsel %vm77_vm6, %v1165_v11, 0.0  ;;  %v766_v32 = vsel %vm77_vm6, %v647_v48, 0.0  ;;  %v1264_v4 = vsel %vm77_vm6, %v1146_v52, 0.0  ;;  %v3101_v61 = vld [vmem:[#allocation21_spill] sm:$0xff]  ;;  %v3102_v48 = vld [vmem:[#allocation22_spill] sm:$0xff] }
 0x113   :  { %v824_v14 = vadd.f32 %v823_v28, %v3097_v0  ;;  %v1322_v44 = vadd.f32 %v1321_v18, %v3098_v25  ;;  %v725_v12 = vrot.slane %v724_v15, 1  ;;  %v1223_v26 = vrot.slane %v1222_v62, 1  ;;  %v2680_v0 = vpop.permute.xlu0 %231  ;;  %v3103_v25 = vld [vmem:[#allocation23_spill] sm:$0xff] }
 0x114   :  { %v847_v16 = vsel %vm77_vm6, %v673_v30, 0.0  ;;  %v1345_v13 = vsel %vm77_vm6, %v1172_v37, 0.0  ;;  %vm588_vm2 = vcmp.eq.s32.totalorder %v3099_v59, %v1811_v54  ;;  %vm1087_vm5 = vcmp.eq.s32.totalorder %v3100_v19, %v1811_v54 }
 0x115   :  { %v2671_v29 = vadd.f32 %v743_v27, %v3101_v61  ;;  %v2674_v52 = vadd.f32 %v1241_v20, %v3102_v48  ;;  %v825_v38 = vrot.slane %v824_v14, 4  ;;  %v1323_v11 = vrot.slane %v1322_v44, 4 }
 0x116   :  { %v726_v28 = vadd.f32 %v725_v12, %v724_v15  ;;  %v1224_v18 = vadd.f32 %v1223_v26, %v1222_v62  ;;  %v2676_v30 = vadd.f32 %v767_v55, %v766_v32  ;;  %v2678_v37 = vadd.f32 %v1265_v3, %v1264_v4  ;;  %v354_v15 = vpop.permute.xlu1 %353 }
 0x117   :  { %v2683_v45 = vadd.f32 %v847_v16, %v3103_v25  ;;  %v2686_v33 = vadd.f32 %v1345_v13, %v2486_v49  ;;  %v826_v27 = vadd.f32 %v825_v38, %v824_v14  ;;  %v1324_v61 = vadd.f32 %v1323_v11, %v1322_v44  ;;  %v3105_v13 = vld [vmem:[#allocation27_spill] sm:$0xff]  ;;  %v3106_v38 = vld [vmem:[#allocation26_spill] sm:$0xff]  ;;  %v3107_v11 = vld [vmem:[#allocation28_spill] sm:$0xff] }
 0x118   :  { %v2690_v20 = vsel %vm1414_vm12, %v726_v28, %v2493_v7  ;;  %v2694_v55 = vsel %vm1414_vm12, %v1224_v18, %v2496_v40  ;;  %v680_v3 = vsel %vm616_vm13, %v2608_v5, 0.0  ;;  %v1179_v49 = vsel %vm1115_vm14, %v2608_v5, 0.0 }
 0x119   :  { %vm613_vm7 = vcmp.eq.s32.totalorder %v2354_v36, %v1883_v10  ;;  %vm1112_vm8 = vcmp.eq.s32.totalorder %v2364_v43, %v1883_v10  ;;  %vm606_vm9 = vcmp.eq.s32.totalorder %v2033_v24, %v2266_v63  ;;  %vm1105_vm10 = vcmp.eq.s32.totalorder %v2038_v47, %v2266_v63 }
 0x11a   :  { %v827_v7 = vrot.slane %v826_v27, 2  ;;  %v1325_v40 = vrot.slane %v1324_v61, 2  ;;  %v679_v16 = vsel %vm615_vm15, %v2610_v50, 0.0  ;;  %vm3104_vm11 = vcmp.eq.s32.totalorder %v2412_v31, %v1701_v1 }
 0x11b   :  { %v1178_v5 = vsel %vm3104_vm11, %v2610_v50, 0.0  ;;  %v645_v62 = vsel %vm581_vm1, %v202_v6, 0.0  ;;  %v1144_v32 = vsel %vm1080_vm3, %v202_v6, 0.0  ;;  %v638_v4 = vsel %vm574_vm4, %v168_v9, 0.0 }
 0x11c   :  { %v1137_v14 = vsel %vm1073_vm0, %v168_v9, 0.0  ;;  %vm587_vm13 = vcmp.eq.s32.totalorder %v3099_v59, %v1701_v1  ;;  %vm1086_vm14 = vcmp.eq.s32.totalorder %v3100_v19, %v1701_v1  ;;  %v828_v50 = vadd.f32 %v827_v7, %v826_v27  ;;  %v320_v9 = vpop.permute.xlu0 %319 }
 0x11d   :  { %v1326_v44 = vadd.f32 %v1325_v40, %v1324_v61  ;;  %v732_v12 = vsel %vm77_vm6, %v638_v4, 0.0  ;;  %v1230_v6 = vsel %vm77_vm6, %v1137_v14, 0.0  ;;  %v871_v26 = vsel %vm77_vm6, %v680_v3, 0.0 }
 0x11e   :  { %v1369_v21 = vsel %vm77_vm6, %v1179_v49, 0.0  ;;  %v733_v48 = vadd.f32 %v732_v12, %v3105_v13  ;;  %v1231_v53 = vadd.f32 %v1230_v6, %v2530_v35  ;;  %vm620_vm15 = vcmp.eq.s32.totalorder %v3106_v38, %v1811_v54 }
 0x11f   :  { %vm1119_vm0 = vcmp.eq.s32.totalorder %v3107_v11, %v1811_v54  ;;  %v829_v28 = vrot.slane %v828_v50, 1  ;;  %v1327_v18 = vrot.slane %v1326_v44, 1  ;;  %v870_v25 = vsel %vm77_vm6, %v679_v16, 0.0  ;;  %v388_v16 = vpop.permute.xlu1 %387 }
 0x120   :  { %v1368_v27 = vsel %vm77_vm6, %v1178_v5, 0.0  ;;  %v756_v61 = vsel %vm77_vm6, %v645_v62, 0.0  ;;  %v1254_v3 = vsel %vm77_vm6, %v1144_v32, 0.0  ;;  %v734_v49 = vrot.slane %v733_v48, 4 }
 0x121   :  { %v1232_v7 = vrot.slane %v1231_v53, 4  ;;  %v830_v35 = vadd.f32 %v829_v28, %v828_v50  ;;  %v1328_v40 = vadd.f32 %v1327_v18, %v1326_v44  ;;  %vm1416_vm1 = vcmask 1043459  }
 0x122   :  { %v652_v4 = vsel %vm588_vm2, %v236_v58, 0.0  ;;  %v1151_v14 = vsel %vm1087_vm5, %v236_v58, 0.0  ;;  %v2756_v12 = vadd.f32 %v871_v26, %v870_v25  ;;  %v2758_v5 = vadd.f32 %v1369_v21, %v1368_v27  ;;  %v384_v26 = vpop.permute.xlu0 %383 }
 0x123   :  { %v735_v62 = vadd.f32 %v734_v49, %v733_v48  ;;  %v1233_v32 = vadd.f32 %v1232_v7, %v1231_v53  ;;  %vm619_vm3 = vcmp.eq.s32.totalorder %v3106_v38, %v1701_v1  ;;  %v2766_v50 = vsel %vm1414_vm12, %v830_v35, %v2623_v2 }
 0x124   :  { %v2770_v58 = vsel %vm1414_vm12, %v1328_v40, %v2626_v34  ;;  %v2773_v44 = vadd.f32 %v756_v61, %v2556_v42  ;;  %v2776_v6 = vadd.f32 %v1254_v3, %v2558_v8  ;;  %vm585_vm2 = vcmp.eq.s32.totalorder %v2367_v17, %v1883_v10 }
 0x125   :  { %vm1084_vm5 = vcmp.eq.s32.totalorder %v2406_v41, %v1883_v10  ;;  %vm578_vm11 = vcmp.eq.s32.totalorder %v2128_v46, %v2266_v63  ;;  %vm1077_vm4 = vcmp.eq.s32.totalorder %v2132_v60, %v2266_v63  ;;  %v736_v2 = vrot.slane %v735_v62, 2 }
 0x126   :  { %v1234_v34 = vrot.slane %v1233_v32, 2  ;;  %v2787_v42 = vsel %vm77_vm6, %v652_v4, 0.0  ;;  %v2790_v8 = vsel %vm77_vm6, %v1151_v14, 0.0  ;;  %v677_v21 = vsel %vm613_vm7, %v354_v15, 0.0 }
 0x127   :  { %v1176_v13 = vsel %vm1112_vm8, %v354_v15, 0.0  ;;  %v670_v48 = vsel %vm606_vm9, %v320_v9, 0.0  ;;  %v1169_v53 = vsel %vm1105_vm10, %v320_v9, 0.0  ;;  %v737_v28 = vadd.f32 %v736_v2, %v735_v62  ;;  %v221_v9 = vpop.permute.xlu1 %220 }
 0x128   :  { %v1235_v18 = vadd.f32 %v1234_v34, %v1233_v32  ;;  %v836_v25 = vsel %vm77_vm6, %v670_v48, 0.0  ;;  %v1334_v27 = vsel %vm77_vm6, %v1169_v53, 0.0  ;;  %v651_v61 = vsel %vm587_vm13, %v2680_v0, 0.0  ;;  %v187_v34 = vpop.permute.xlu0 %186  ;;  %v3110_v48 = vld [vmem:[#allocation30_spill] sm:$0xff] }
 0x129   :  { %v1150_v24 = vsel %vm1086_vm14, %v2680_v0, 0.0  ;;  %v837_v15 = vadd.f32 %v836_v25, %v2565_v51  ;;  %v1335_v47 = vadd.f32 %v1334_v27, %v2568_v23  ;;  %vm617_vm12 = vcmp.eq.s32.totalorder %v2409_v57, %v1883_v10  ;;  %v3108_v51 = vld [vmem:[#allocation17_spill] sm:$0xff] }
 0x12a   :  { %vm1116_vm7 = vcmp.eq.s32.totalorder %v2412_v31, %v1883_v10  ;;  %v738_v3 = vrot.slane %v737_v28, 1  ;;  %v1236_v49 = vrot.slane %v1235_v18, 1  ;;  %v860_v7 = vsel %vm77_vm6, %v677_v21, 0.0  ;;  %v3109_v21 = vld [vmem:[#allocation29_spill] sm:$0xff] }
 0x12b   :  { %v1358_v35 = vsel %vm77_vm6, %v1176_v13, 0.0  ;;  %vm610_vm8 = vcmp.eq.s32.totalorder %v2212_v39, %v2266_v63  ;;  %vm1109_vm9 = vcmp.eq.s32.totalorder %v3108_v51, %v2266_v63  ;;  %v838_v23 = vrot.slane %v837_v15, 4 }
 0x12c   :  { %v1336_v0 = vrot.slane %v1335_v47, 4  ;;  %v684_v40 = vsel %vm620_vm15, %v388_v16, 0.0  ;;  %v1183_v4 = vsel %vm1119_vm0, %v388_v16, 0.0  ;;  %v739_v14 = vadd.f32 %v738_v3, %v737_v28 }
 0x12d   :  { %v1237_v62 = vadd.f32 %v1236_v49, %v1235_v18  ;;  %v2833_v32 = vsel %vm77_vm6, %v651_v61, 0.0  ;;  %v2836_v2 = vsel %vm77_vm6, %v1150_v24, 0.0  ;;  %v2839_v13 = vadd.f32 %v860_v7, %v3109_v21 }
 0x12e   :  { %v2842_v53 = vadd.f32 %v1358_v35, %v3110_v48  ;;  %v839_v25 = vadd.f32 %v838_v23, %v837_v15  ;;  %v1337_v27 = vadd.f32 %v1336_v0, %v1335_v47  ;;  %v2846_v54 = vsel %vm1416_vm1, %v739_v14, %v2690_v20  ;;  %v373_v20 = vpop.permute.xlu1 %372 }
 0x12f   :  { %v2850_v16 = vsel %vm1416_vm1, %v1237_v62, %v2694_v55  ;;  %v884_v28 = vsel %vm77_vm6, %v684_v40, 0.0  ;;  %v1382_v18 = vsel %vm77_vm6, %v1183_v4, 0.0  ;;  %v683_v3 = vsel %vm619_vm3, %v384_v26, 0.0  ;;  %v339_v40 = vpop.permute.xlu0 %338 }
 0x130   :  { %v840_v61 = vrot.slane %v839_v25, 2  ;;  %v1338_v24 = vrot.slane %v1337_v27, 2  ;;  %vm3111_vm10 = vcmp.eq.s32.totalorder %v3107_v11, %v1701_v1  ;;  %v649_v55 = vsel %vm585_vm2, %v221_v9, 0.0 }
 0x131   :  { %v1182_v15 = vsel %vm3111_vm10, %v384_v26, 0.0  ;;  %v1148_v47 = vsel %vm1084_vm5, %v221_v9, 0.0  ;;  %v642_v49 = vsel %vm578_vm11, %v187_v34, 0.0  ;;  %v1141_v7 = vsel %vm1077_vm4, %v187_v34, 0.0 }
 0x132   :  { %vm582_vm13 = vcmp.eq.s32.totalorder %v2342_v22, %v2266_v63  ;;  %vm1081_vm14 = vcmp.eq.s32.totalorder %v2346_v56, %v2266_v63  ;;  %v841_v1 = vadd.f32 %v840_v61, %v839_v25  ;;  %v1339_v26 = vadd.f32 %v1338_v24, %v1337_v27 }
 0x133   :  { %v745_v35 = vsel %vm77_vm6, %v642_v49, 0.0  ;;  %v1243_v9 = vsel %vm77_vm6, %v1141_v7, 0.0  ;;  %v883_v23 = vsel %vm77_vm6, %v683_v3, 0.0  ;;  %v1381_v46 = vsel %vm77_vm6, %v1182_v15, 0.0  ;;  %v2900_v3 = vpop.permute.xlu1 %239 }
 0x134   :  { %v746_v0 = vadd.f32 %v745_v35, %v2671_v29  ;;  %v1244_v60 = vadd.f32 %v1243_v9, %v2674_v52  ;;  %v842_v4 = vrot.slane %v841_v1, 1  ;;  %v1340_v14 = vrot.slane %v1339_v26, 1  ;;  %v206_v9 = vpop.permute.xlu0 %205 }
 0x135   :  { %v769_v62 = vsel %vm77_vm6, %v649_v55, 0.0  ;;  %v1267_v34 = vsel %vm77_vm6, %v1148_v47, 0.0  ;;  %vm621_vm15 = vcmp.eq.s32.totalorder %v3106_v38, %v1883_v10  ;;  %vm1120_vm0 = vcmp.eq.s32.totalorder %v3107_v11, %v1883_v10 }
 0x136   :  { %v747_v21 = vrot.slane %v746_v0, 4  ;;  %v1245_v48 = vrot.slane %v1244_v60, 4  ;;  %v681_v29 = vsel %vm617_vm12, %v373_v20, 0.0  ;;  %v1180_v52 = vsel %vm1116_vm7, %v373_v20, 0.0 }
 0x137   :  { %v843_v25 = vadd.f32 %v842_v4, %v841_v1  ;;  %v1341_v27 = vadd.f32 %v1340_v14, %v1339_v26  ;;  %vm1418_vm3 = vcmask 1044484   ;;  %v674_v61 = vsel %vm610_vm8, %v339_v40, 0.0  ;;  %v392_v4 = vpop.permute.xlu1 %391 }
 0x138   :  { %v1173_v24 = vsel %vm1109_vm9, %v339_v40, 0.0  ;;  %v748_v15 = vadd.f32 %v747_v21, %v746_v0  ;;  %v1246_v55 = vadd.f32 %v1245_v48, %v1244_v60  ;;  %v849_v47 = vsel %vm77_vm6, %v674_v61, 0.0 }
 0x139   :  { %v1347_v49 = vsel %vm77_vm6, %v1173_v24, 0.0  ;;  %v2906_v20 = vsel %vm1416_vm1, %v843_v25, %v2766_v50  ;;  %v2910_v39 = vsel %vm1416_vm1, %v1341_v27, %v2770_v58  ;;  %v850_v7 = vadd.f32 %v849_v47, %v2683_v45 }
 0x13a   :  { %v1348_v51 = vadd.f32 %v1347_v49, %v2686_v33  ;;  %vm614_vm4 = vcmp.eq.s32.totalorder %v2354_v36, %v2266_v63  ;;  %vm1113_vm2 = vcmp.eq.s32.totalorder %v2364_v43, %v2266_v63  ;;  %v2918_v1 = vadd.f32 %v884_v28, %v883_v23 }
 0x13b   :  { %v2920_v26 = vadd.f32 %v1382_v18, %v1381_v46  ;;  %v749_v50 = vrot.slane %v748_v15, 2  ;;  %v1247_v35 = vrot.slane %v1246_v55, 2  ;;  %v2923_v58 = vadd.f32 %v769_v62, %v2676_v30 }
 0x13c   :  { %v2926_v45 = vadd.f32 %v1267_v34, %v2678_v37  ;;  %v851_v33 = vrot.slane %v850_v7, 4  ;;  %v1349_v0 = vrot.slane %v1348_v51, 4  ;;  %vm618_vm1 = vcmp.eq.s32.totalorder %v2409_v57, %v2266_v63 }
 0x13d   :  { %vm1117_vm5 = vcmp.eq.s32.totalorder %v2412_v31, %v2266_v63  ;;  %v750_v28 = vadd.f32 %v749_v50, %v748_v15  ;;  %v1248_v18 = vadd.f32 %v1247_v35, %v1246_v55  ;;  %v873_v23 = vsel %vm77_vm6, %v681_v29, 0.0  ;;  %v358_v55 = vpop.permute.xlu0 %357 }
 0x13e   :  { %v1371_v46 = vsel %vm77_vm6, %v1180_v52, 0.0  ;;  %v852_v60 = vadd.f32 %v851_v33, %v850_v7  ;;  %v1350_v30 = vadd.f32 %v1349_v0, %v1348_v51  ;;  %v646_v37 = vsel %vm582_vm13, %v206_v9, 0.0  ;;  %v377_v0 = vpop.permute.xlu1 %376 }
 0x13f   :  { %v1145_v40 = vsel %vm1081_vm14, %v206_v9, 0.0  ;;  %v751_v14 = vrot.slane %v750_v28, 1  ;;  %v1249_v62 = vrot.slane %v1248_v18, 1  ;;  %v758_v34 = vsel %vm77_vm6, %v646_v37, 0.0 }
 0x140   :  { %v1256_v21 = vsel %vm77_vm6, %v1145_v40, 0.0  ;;  %v853_v48 = vrot.slane %v852_v60, 2  ;;  %v1351_v29 = vrot.slane %v1350_v30, 2  ;;  %v759_v52 = vadd.f32 %v758_v34, %v2773_v44 }
 0x141   :  { %v1257_v25 = vadd.f32 %v1256_v21, %v2776_v6  ;;  %vm586_vm11 = vcmp.eq.s32.totalorder %v2367_v17, %v2266_v63  ;;  %vm1085_vm12 = vcmp.eq.s32.totalorder %v2406_v41, %v2266_v63  ;;  %v752_v22 = vadd.f32 %v751_v14, %v750_v28 }
 0x142   :  { %v1250_v56 = vadd.f32 %v1249_v62, %v1248_v18  ;;  %v685_v27 = vsel %vm621_vm15, %v392_v4, 0.0  ;;  %v1184_v61 = vsel %vm1120_vm0, %v392_v4, 0.0  ;;  %v854_v24 = vadd.f32 %v853_v48, %v852_v60  ;;  %v225_v62 = vpop.permute.xlu0 %224 }
 0x143   :  { %v1352_v44 = vadd.f32 %v1351_v29, %v1350_v30  ;;  %v760_v15 = vrot.slane %v759_v52, 4  ;;  %v1258_v6 = vrot.slane %v1257_v25, 4  ;;  %v1419_v47 = vsel %vm1418_vm3, %v752_v22, %v2846_v54 }
 0x144   :  { %v1458_v49 = vsel %vm1418_vm3, %v1250_v56, %v2850_v16  ;;  %v874_v7 = vadd.f32 %v873_v23, %v2756_v12  ;;  %v1372_v51 = vadd.f32 %v1371_v46, %v2758_v5  ;;  %vm1420_vm7 = vcmask 1045509  }
 0x145   :  { %v855_v50 = vrot.slane %v854_v24, 1  ;;  %v1353_v35 = vrot.slane %v1352_v44, 1  ;;  %v761_v9 = vadd.f32 %v760_v15, %v759_v52  ;;  %v1259_v33 = vadd.f32 %v1258_v6, %v1257_v25 }
 0x146   :  { %vm589_vm8 = vcmp.eq.s32.totalorder %v3099_v59, %v1883_v10  ;;  %vm1088_vm9 = vcmp.eq.s32.totalorder %v3100_v19, %v1883_v10  ;;  %v886_v54 = vsel %vm77_vm6, %v685_v27, 0.0  ;;  %v1384_v16 = vsel %vm77_vm6, %v1184_v61, 0.0 }
 0x147   :  { %v678_v12 = vsel %vm614_vm4, %v358_v55, 0.0  ;;  %v1177_v5 = vsel %vm1113_vm2, %v358_v55, 0.0  ;;  %vm622_vm10 = vcmp.eq.s32.totalorder %v3106_v38, %v2266_v63  ;;  %vm1121_vm13 = vcmp.eq.s32.totalorder %v3107_v11, %v2266_v63  ;;  %v396_v55 = vpop.permute.xlu1 %395 }
 0x148   :  { %v856_v28 = vadd.f32 %v855_v50, %v854_v24  ;;  %v1354_v18 = vadd.f32 %v1353_v35, %v1352_v44  ;;  %v762_v23 = vrot.slane %v761_v9, 2  ;;  %v1260_v46 = vrot.slane %v1259_v33, 2 }
 0x149   :  { %v862_v60 = vsel %vm77_vm6, %v678_v12, 0.0  ;;  %v1360_v30 = vsel %vm77_vm6, %v1177_v5, 0.0  ;;  %v682_v36 = vsel %vm618_vm1, %v377_v0, 0.0  ;;  %v1181_v43 = vsel %vm1117_vm5, %v377_v0, 0.0 }
 0x14a   :  { %v2986_v37 = vsel %vm1418_vm3, %v856_v28, %v2906_v20  ;;  %v2990_v40 = vsel %vm1418_vm3, %v1354_v18, %v2910_v39  ;;  %v763_v4 = vadd.f32 %v762_v23, %v761_v9  ;;  %v1261_v14 = vadd.f32 %v1260_v46, %v1259_v33 }
 0x14b   :  { %v863_v34 = vadd.f32 %v862_v60, %v2839_v13  ;;  %v1361_v57 = vadd.f32 %v1360_v30, %v2842_v53  ;;  %v875_v21 = vsel %vm77_vm6, %v682_v36, 0.0  ;;  %v1373_v31 = vsel %vm77_vm6, %v1181_v43, 0.0 }
 0x14c   :  { %v764_v48 = vrot.slane %v763_v4, 1  ;;  %v1262_v29 = vrot.slane %v1261_v14, 1  ;;  %v876_v52 = vadd.f32 %v875_v21, %v874_v7  ;;  %v1374_v20 = vadd.f32 %v1373_v31, %v1372_v51 }
 0x14d   :  { %v864_v25 = vrot.slane %v863_v34, 4  ;;  %v1362_v22 = vrot.slane %v1361_v57, 4  ;;  %v650_v39 = vsel %vm586_vm11, %v225_v62, 0.0  ;;  %v1149_v13 = vsel %vm1085_vm12, %v225_v62, 0.0 }
 0x14e   :  { %v765_v56 = vadd.f32 %v764_v48, %v763_v4  ;;  %v1263_v53 = vadd.f32 %v1262_v29, %v1261_v14  ;;  %v877_v27 = vrot.slane %v876_v52, 4  ;;  %v1375_v61 = vrot.slane %v1374_v20, 4 }
 0x14f   :  { %v865_v24 = vadd.f32 %v864_v25, %v863_v34  ;;  %v1363_v44 = vadd.f32 %v1362_v22, %v1361_v57  ;;  %v771_v15 = vsel %vm77_vm6, %v650_v39, 0.0  ;;  %v1269_v6 = vsel %vm77_vm6, %v1149_v13, 0.0  ;;  %v244_v34 = vpop.permute.xlu0 %243 }
 0x150   :  { %v3005_v7 = vsel %vm1420_vm7, %v765_v56, %v1419_v47  ;;  %v3008_v17 = vsel %vm1420_vm7, %v1263_v53, %v1458_v49  ;;  %v878_v51 = vadd.f32 %v877_v27, %v876_v52  ;;  %v1376_v41 = vadd.f32 %v1375_v61, %v1374_v20 }
 0x151   :  { %vm590_vm14 = vcmp.eq.s32.totalorder %v3099_v59, %v2266_v63  ;;  %v866_v50 = vrot.slane %v865_v24, 2  ;;  %v1364_v35 = vrot.slane %v1363_v44, 2  ;;  %v772_v9 = vadd.f32 %v771_v15, %v2923_v58  ;;  %v1533_v59 = vld [vmem:[#allocation6 + $0x8] sm:$0xff] }
 0x152   :  { %v1270_v33 = vadd.f32 %v1269_v6, %v2926_v45  ;;  %v653_v47 = vsel %vm589_vm8, %v2900_v3, 0.0  ;;  %v1152_v49 = vsel %vm1088_vm9, %v2900_v3, 0.0  ;;  %v686_v0 = vsel %vm622_vm10, %v396_v55, 0.0 }
 0x153   :  { %v1185_v58 = vsel %vm1121_vm13, %v396_v55, 0.0  ;;  %v879_v12 = vrot.slane %v878_v51, 2  ;;  %v1377_v45 = vrot.slane %v1376_v41, 2  ;;  %v773_v5 = vrot.slane %v772_v9, 4 }
 0x154   :  { %v1271_v28 = vrot.slane %v1270_v33, 4  ;;  %v887_v18 = vadd.f32 %v886_v54, %v2918_v1  ;;  %v1385_v23 = vadd.f32 %v1384_v16, %v2920_v26  ;;  %v888_v46 = vsel %vm77_vm6, %v686_v0, 0.0 }
 0x155   :  { %v1386_v10 = vsel %vm77_vm6, %v1185_v58, 0.0  ;;  %v782_v3 = vsel %vm77_vm6, %v653_v47, 0.0  ;;  %v1280_v38 = vsel %vm77_vm6, %v1152_v49, 0.0  ;;  %v867_v60 = vadd.f32 %v866_v50, %v865_v24 }
 0x156   :  { %v1365_v30 = vadd.f32 %v1364_v35, %v1363_v44  ;;  %v774_v11 = vadd.f32 %v773_v5, %v772_v9  ;;  %v1272_v36 = vadd.f32 %v1271_v28, %v1270_v33  ;;  %v889_v43 = vadd.f32 %v888_v46, %v887_v18 }
 0x157   :  { %v1387_v4 = vadd.f32 %v1386_v10, %v1385_v23  ;;  %v781_v14 = vadd.f32 %v2787_v42, %v2833_v32  ;;  %v1279_v1 = vadd.f32 %v2790_v8, %v2836_v2  ;;  %v880_v26 = vadd.f32 %v879_v12, %v878_v51  ;;  %v87_v12 = vld [vmem:[#allocation9 + $0x8] sm:$0xff] }
 0x158   :  { %v1378_v54 = vadd.f32 %v1377_v45, %v1376_v41  ;;  %vm1422_vm15 = vcmask 1046534   ;;  %v890_v16 = vrot.slane %v889_v43, 4  ;;  %vm1089_vm0 = vcmp.eq.s32.totalorder %v3100_v19, %v2266_v63 }
 0x159   :  { %v1388_v62 = vrot.slane %v1387_v4, 4  ;;  %v783_v57 = vadd.f32 %v782_v3, %v781_v14  ;;  %v1281_v21 = vadd.f32 %v1280_v38, %v1279_v1  ;;  %v868_v31 = vrot.slane %v867_v60, 1  ;;  %v1438_v14 = vld [vmem:[#allocation2 + $0x8] sm:$0xff] }
 0x15a   :  { %v1366_v48 = vrot.slane %v1365_v30, 1  ;;  %v775_v29 = vrot.slane %v774_v11, 2  ;;  %v1273_v52 = vrot.slane %v1272_v36, 2  ;;  %v891_v20 = vadd.f32 %v890_v16, %v889_v43 }
 0x15b   :  { %v1389_v42 = vadd.f32 %v1388_v62, %v1387_v4  ;;  %v881_v32 = vrot.slane %v880_v26, 1  ;;  %v1379_v25 = vrot.slane %v1378_v54, 1  ;;  %v654_v8 = vsel %vm590_vm14, %v244_v34, 0.0 }
 0x15c   :  { %v1153_v2 = vsel %vm1089_vm0, %v244_v34, 0.0  ;;  %v892_v22 = vrot.slane %v891_v20, 2  ;;  %v784_v19 = vsel %vm77_vm6, %v654_v8, 0.0  ;;  %v869_v56 = vadd.f32 %v868_v31, %v867_v60 }
 0x15d   :  { %v1390_v39 = vrot.slane %v1389_v42, 2  ;;  %v1282_v13 = vsel %vm77_vm6, %v1153_v2, 0.0  ;;  %v1367_v53 = vadd.f32 %v1366_v48, %v1365_v30  ;;  %v785_v27 = vadd.f32 %v784_v19, %v783_v57 }
 0x15e   :  { %v1283_v61 = vadd.f32 %v1282_v13, %v1281_v21  ;;  %v776_v24 = vadd.f32 %v775_v29, %v774_v11  ;;  %v1274_v44 = vadd.f32 %v1273_v52, %v1272_v36  ;;  %v893_v15 = vadd.f32 %v892_v22, %v891_v20 }
 0x15f   :  { %v1391_v6 = vadd.f32 %v1390_v39, %v1389_v42  ;;  %v882_v55 = vadd.f32 %v881_v32, %v880_v26  ;;  %v1380_v51 = vadd.f32 %v1379_v25, %v1378_v54  ;;  %v786_v41 = vrot.slane %v785_v27, 4  ;;  %v86_v26 = vld [vmem:[#allocation9] sm:$0xff] }
 0x160   :  { %v1284_v63 = vrot.slane %v1283_v61, 4  ;;  %vm1395_vm3 = vcmp.ne.s32.totalorder %v1533_v59, 4294967295  ;;  %vm1424_vm4 = vcmask 1047559   ;;  %v894_v50 = vrot.slane %v893_v15, 1  ;;  %v1534_v54 = vld [vmem:[#allocation6] sm:$0xff] }
 0x161   :  { %v1392_v35 = vrot.slane %v1391_v6, 1  ;;  %v1430_v9 = vsel %vm1420_vm7, %v869_v56, %v2986_v37  ;;  %v1466_v33 = vsel %vm1420_vm7, %v1367_v53, %v2990_v40  ;;  %v787_v47 = vadd.f32 %v786_v41, %v785_v27  ;;  %v1437_v42 = vld [vmem:[#allocation2] sm:$0xff] }
 0x162   :  { %v1285_v49 = vadd.f32 %v1284_v63, %v1283_v61  ;;  %v777_v0 = vrot.slane %v776_v24, 1  ;;  %v1275_v58 = vrot.slane %v1274_v44, 1  ;;  %v895_v45 = vadd.f32 %v894_v50, %v893_v15 }
 0x163   :  { %v1393_v5 = vadd.f32 %v1392_v35, %v1391_v6  ;;  %v1431_v28 = vsel %vm1422_vm15, %v882_v55, %v1430_v9  ;;  %v1467_v18 = vsel %vm1422_vm15, %v1380_v51, %v1466_v33  ;;  %v788_v23 = vrot.slane %v787_v47, 2 }
 0x164   :  { %v1286_v46 = vrot.slane %v1285_v49, 2  ;;  %v1432_v10 = vsel %vm1424_vm4, %v895_v45, %v1431_v28  ;;  %v778_v30 = vadd.f32 %v777_v0, %v776_v24  ;;  %v1276_v11 = vadd.f32 %v1275_v58, %v1274_v44 }
 0x165   :  { %v1468_v37 = vsel %vm1424_vm4, %v1393_v5, %v1467_v18  ;;  %v1436_v3 = vsel %vm1395_vm3, %v1432_v10, -1e+30  ;;  %v789_v38 = vadd.f32 %v788_v23, %v787_v47  ;;  %vm1394_vm2 = vcmp.ne.s32.totalorder %v1534_v54, 4294967295 }
 0x166   :  { %v1472_v40 = vsub.f32 %v87_v12, %v1468_v37  ;;  %v1287_v60 = vadd.f32 %v1286_v46, %v1285_v49  ;;  %v1423_v34 = vsel %vm1422_vm15, %v778_v30, %v3005_v7  ;;  %v1460_v57 = vsel %vm1422_vm15, %v1276_v11, %v3008_v17 }
 0x167   :  { %v790_v43 = vrot.slane %v789_v38, 1  ;;  %vm1499_vm1 = vcmask 0  }
 0x168   :  { %v1474_v36 = vadd.f32 %v1472_v40, %v1436_v3  ;;  %v1288_v4 = vrot.slane %v1287_v60, 1 }
 0x169   :  { %v791_v16 = vadd.f32 %v790_v43, %v789_v38 }
 0x16a   :  { %v1476_v1 = vmax.f32 %v1474_v36, 0.0  ;;  %v1289_v62 = vadd.f32 %v1288_v4, %v1287_v60 }
 0x16b   :  { %v1425_v31 = vsel %vm1424_vm4, %v791_v16, %v1423_v34 }
 0x16c   :  { %v1478_v21 = vadd.f32 %v1476_v1, %v1438_v14  ;;  %v1461_v48 = vsel %vm1424_vm4, %v1289_v62, %v1460_v57  ;;  %v1435_v29 = vsel %vm1394_vm2, %v1425_v31, -1e+30 }
 0x16d   :  { %v1471_v52 = vsub.f32 %v86_v26, %v1461_v48 }
 0x16e   :  { %1480 = vst.msk [vmem:[#allocation2 + $0x8] sm:$0xff] %vm77_vm6, %v1478_v21 }
 0x16f   :  { %v1473_v20 = vadd.f32 %v1471_v52, %v1435_v29 }
 0x171   :  { %v1475_v32 = vmax.f32 %v1473_v20, 0.0 }
 0x173   :  { %v1477_v25 = vadd.f32 %v1475_v32, %v1437_v42 }
 0x175   :  { %1479 = vst.msk [vmem:[#allocation2] sm:$0xff] %vm77_vm6, %v1477_v25  ;;  %v1485_v8 = vld [vmem:[#allocation2 + $0x8] sm:$0xff] }
 0x176   :  { %v1487_v7 = vsel %vm77_vm6, %v1485_v8, 0.0 }
 0x17c   :  { %v1484_v2 = vld [vmem:[#allocation2] sm:$0xff] }
 0x17d   :  { %v1486_v17 = vsel %vm77_vm6, %v1484_v2, 0.0 }
 0x17e   :  { %v1488_v22 = vadd.f32 %v1487_v7, %v1486_v17 }
 0x180   :  { %1489 = vadd.xlane.f32.xlu0 %v1488_v22 }
 0x209   :  { %v1490_v39 = vpop.xlane.xlu0 %1489 }
 0x20a   :  { %v1491_v19 = vrot.slane %v1490_v39, 4 }
 0x20c   :  { %v1492_v13 = vadd.f32 %v1491_v19, %v1490_v39 }
 0x20e   :  { %v1493_v56 = vrot.slane %v1492_v13, 2 }
 0x210   :  { %v1494_v53 = vadd.f32 %v1493_v56, %v1492_v13 }
 0x212   :  { %v1495_v27 = vrot.slane %v1494_v53, 1 }
 0x214   :  { %v1496_v61 = vadd.f32 %v1495_v27, %v1494_v53 }
 0x216   :  { %1518 = vpush %v1496_v61 }
 0x247   :  { %s1519_s9 = spop %1518 }
 0x248   :  { %v1498_v24 = vstv %s1519_s9 }
 0x249   :  { %1500 = vst.msk [vmem:[#allocation11] sm:$0x1] %vm1499_vm1, %v1498_v24 }
 0x24a   :  { %1626 = shalt.err (!%p1623_p10)
}
 0x24b   :  { %1510 = dma.vmem_to_hbm [thread:$0]  %s1508_s3, 16, %s3071_s4, [#allocation5]  }
 0x24c   :  { %1641 = dma.done.wait [#allocation5], 16  }
 0x24d   :  { %1642 = vsyncadd [#allocation5], 4294967280 }
 0x24e   :  { %1514 = vsyncpa [#allocation4], 1 }
 0x24f   :  { %1515 = vsyncpa [#allocation7], 1 }
 0x250   :  { %1516 = vsyncpa [#allocation10], 1 }
 0x251   :  { %1517 = vsyncpa [#allocation5], 1 }

</bundles_post_ra>
